<compile_context>
chip_gen: v7x
topology: tpu7x:2x2x1
jax: 0.10.0
libtpu: 0.0.40
codegen_flags: <defaults>
</compile_context>

<pallas_src>
import functools

import jax
import jax.numpy as jnp
from jax.experimental import pallas as pl
from jax.experimental.pallas import tpu as pltpu


_LAYERS = ("enc1", "enc2", "enc3", "z", "dec1", "dec2", "dec3", "xbar")
_RELU = (True, True, True, False, True, True, True, False)


def _round_up(a, m):
    return ((a + m - 1) // m) * m


# ----------------------------------------------------------------- fused kernel
def _ae_fused_kernel(x_ref, *refs, out_cols, compute_dtype):
    """refs = [w0, b0, w1, b1, ..., w7, b7, slab_out].

    All 8 Linear layers run back-to-back; intermediates stay in VMEM/vregs.
    Each returned activation (x_bar/enc_h1/enc_h2/enc_h3/z) is stored into its
    column slice of the single lane-dense output slab immediately after it is
    produced, so writeback DMAs overlap the remaining decoder matmuls.
    """
    w_refs = refs[0:16:2]
    b_refs = refs[1:16:2]
    slab_ref = refs[16]

    h = x_ref[...]
    for idx, (relu, cols) in enumerate(zip(_RELU, out_cols)):
        w = w_refs[idx][...]          # pre-cast (bf16 or f32) in the wrapper
        b = b_refs[idx][...]          # f32 [1, out] -> broadcasts over rows
        y = jnp.dot(h.astype(compute_dtype), w,
                    preferred_element_type=jnp.float32) + b
        if relu:
            y = jnp.maximum(y, 0.0)
        if cols is not None:
            c0, c1 = cols
            slab_ref[:, c0:c1] = y
        h = y


# --------------------------------------------------------------------- wrapper
def ae_forward(params, x, *, row_tile=256, cast_bf16=True):
    """Returns (x_bar, enc_h1, enc_h2, enc_h3, z) — same as AE.forward.

    NOTE: cast_bf16=True runs the matmuls with bf16 inputs and f32
    accumulation (slightly different numerics vs. PyTorch f32)."""
    n, n_input = x.shape
    ws = [params[name + "_w"] for name in _LAYERS]
    bs = [params[name + "_b"].reshape(1, -1).astype(jnp.float32) for name in _LAYERS]
    dims = [int(w.shape[1]) for w in ws]
    n_enc_1, n_enc_2, n_enc_3, n_z = dims[0], dims[1], dims[2], dims[3]
    assert dims[-1] == n_input, "decoder output dim must equal n_input"

    compute_dtype = jnp.bfloat16 if cast_bf16 else jnp.float32
    ws = [w.astype(compute_dtype) for w in ws]      # one-time pre-cast (wrapper)
    x_in = x.astype(compute_dtype)

    # --- row tiling: multiple of 8 sublanes; >=2 grid steps for v7x megacore.
    tile = min(int(row_tile), _round_up(n, 8))
    tile = max(8, _round_up(tile, 8))
    if pl.cdiv(n, tile) < 2 and n >= 16:
        tile = _round_up(pl.cdiv(n, 2), 8)
    grid = (pl.cdiv(n, tile),)

    # --- lane-dense output slab layout: [x_bar | enc_h1 | enc_h2 | enc_h3 | z]
    slab_order = (("xbar", n_input), ("enc1", n_enc_1), ("enc2", n_enc_2),
                  ("enc3", n_enc_3), ("z", n_z))
    cols = {}
    off = 0
    for name, width in slab_order:
        cols[name] = (off, off + width)
        off += width
    slab_width = off
    out_cols = tuple(cols.get(name) for name in _LAYERS)

    flat_params = []
    for w, b in zip(ws, bs):
        flat_params += [w, b]

    # --- advisory cost estimate (dtype-aware)
    flops = 2 * n * sum(int(w.shape[0]) * int(w.shape[1]) for w in ws)
    param_bytes = sum(int(a.size) * a.dtype.itemsize for a in flat_params)
    bytes_accessed = (int(x_in.size) * x_in.dtype.itemsize
                      + param_bytes
                      + n * slab_width * 4)

    # --- VMEM budget: single-buffered resident params + double-buffered row
    #     blocks / output slab + live intermediates, capped generation-aware.
    x_tile_bytes = tile * n_input * x_in.dtype.itemsize
    slab_tile_bytes = tile * slab_width * 4
    act_bytes = 4 * tile * (n_input + sum(dims))
    vmem_est = (param_bytes + 2 * x_tile_bytes + 2 * slab_tile_bytes
                + act_bytes + (2 << 20))
    try:
        vmem_cap = int(pltpu.get_tpu_info().vmem_capacity_bytes)
    except Exception:
        vmem_cap = 64 * 1024 * 1024          # conservative (v7x per-TC) default
    cap_safe = int(vmem_cap * 0.85)          # never request full physical VMEM
    vmem_limit = max(min(int(vmem_est), cap_safe),
                     min(32 * 1024 * 1024, cap_safe))

    row_map = lambda i: (i, 0)
    const_map = lambda i: (0, 0)             # same block every step -> resident

    def build_specs(single_buffer_consts):
        const_kwargs = {}
        if single_buffer_consts:
            const_kwargs = dict(pipeline_mode=pl.Buffered(1))
        in_specs = [pl.BlockSpec((tile, n_input), row_map)]
        for w, b in zip(ws, bs):
            in_specs.append(pl.BlockSpec(tuple(w.shape), const_map, **const_kwargs))
            in_specs.append(pl.BlockSpec(tuple(b.shape), const_map, **const_kwargs))
        out_spec = pl.BlockSpec((tile, slab_width), row_map)
        return in_specs, out_spec

    kernel = functools.partial(_ae_fused_kernel, out_cols=out_cols,
                               compute_dtype=compute_dtype)
    out_shape = jax.ShapeDtypeStruct((n, slab_width), jnp.float32)

    def call(single_buffer_consts):
        in_specs, out_spec = build_specs(single_buffer_consts)
        return pl.pallas_call(
            kernel,
            out_shape=out_shape,
            grid=grid,
            in_specs=in_specs,
            out_specs=out_spec,
            compiler_params=pltpu.CompilerParams(
                dimension_semantics=("parallel",),
                vmem_limit_bytes=int(vmem_limit),
            ),
            cost_estimate=pl.CostEstimate(
                flops=int(flops), transcendentals=0,
                bytes_accessed=int(bytes_accessed)),
        )(x_in, *flat_params)

    try:
        slab = call(True)      # single-buffered constant weight/bias blocks
    except Exception:
        slab = call(False)     # fallback if Buffered(1) is rejected by this jax

    x_bar = slab[:, cols["xbar"][0]:cols["xbar"][1]]
    enc_h1 = slab[:, cols["enc1"][0]:cols["enc1"][1]]
    enc_h2 = slab[:, cols["enc2"][0]:cols["enc2"][1]]
    enc_h3 = slab[:, cols["enc3"][0]:cols["enc3"][1]]
    z = slab[:, cols["z"][0]:cols["z"][1]]
    return x_bar, enc_h1, enc_h2, enc_h3, z


# -------------------------------------------------------------- pure-JAX reference
def _ae_reference(params, x):
    h = x
    acts = []
    for name, relu in zip(_LAYERS, _RELU):
        h = h @ params[name + "_w"] + params[name + "_b"]
        if relu:
            h = jnp.maximum(h, 0.0)
        acts.append(h)
    enc_h1, enc_h2, enc_h3, z, _d1, _d2, _d3, x_bar = acts
    return x_bar, enc_h1, enc_h2, enc_h3, z


# --------------------------------------------------------------- parameter init
def _glorot(key, shape):
    fan_in, fan_out = shape
    scale = jnp.sqrt(2.0 / (fan_in + fan_out))
    return (scale * jax.random.normal(key, shape)).astype(jnp.float32)


def init_params(key, n_enc_1, n_enc_2, n_enc_3, n_dec_1, n_dec_2, n_dec_3,
                n_input, n_z):
    # NOTE: the PyTorch module would typically load pretrained AE weights;
    # here parameters are initialized deterministically in-script.
    sizes = {
        "enc1": (n_input, n_enc_1), "enc2": (n_enc_1, n_enc_2),
        "enc3": (n_enc_2, n_enc_3), "z": (n_enc_3, n_z),
        "dec1": (n_z, n_dec_1), "dec2": (n_dec_1, n_dec_2),
        "dec3": (n_dec_2, n_dec_3), "xbar": (n_dec_3, n_input),
    }
    keys = jax.random.split(key, 2 * len(sizes))
    params = {}
    for i, (name, shp) in enumerate(sizes.items()):
        params[name + "_w"] = _glorot(keys[2 * i], shp)
        params[name + "_b"] = (0.01 * jax.random.normal(
            keys[2 * i + 1], (shp[1],))).astype(jnp.float32)
    return params


if __name__ == "__main__":
    # Small shapes consistent with the AE forward.
    N = 16
    n_input = 32
    n_enc_1, n_enc_2, n_enc_3 = 64, 64, 32
    n_dec_1, n_dec_2, n_dec_3 = 32, 64, 64
    n_z = 16

    key = jax.random.PRNGKey(0)
    k_param, k_x = jax.random.split(key)

    params = init_params(k_param, n_enc_1, n_enc_2, n_enc_3,
                         n_dec_1, n_dec_2, n_dec_3, n_input, n_z)
    x = jax.random.normal(k_x, (N, n_input), jnp.float32)

    # Call without an outer jit so the Buffered(1) fallback path (if ever
    # needed) is exercised at pallas_call compile time inside the wrapper.
    outs = ae_forward(params, x, cast_bf16=True)
    x_bar, enc_h1, enc_h2, enc_h3, z = jax.block_until_ready(outs)

    # Shape checks (matches AE.forward return order).
    assert x_bar.shape == (N, n_input)
    assert enc_h1.shape == (N, n_enc_1)
    assert enc_h2.shape == (N, n_enc_2)
    assert enc_h3.shape == (N, n_enc_3)
    assert z.shape == (N, n_z)

    # Numerical check against a pure-JAX f32 reference (bf16 MXU inputs,
    # f32 accumulation -> well within the 1e-2 tolerance at these scales).
    refs = _ae_reference(params, x)
    for got, want in zip((x_bar, enc_h1, enc_h2, enc_h3, z), refs):
        assert jnp.allclose(got, want, rtol=1e-2, atol=1e-2), "mismatch vs reference"

    print("KERNEL_OK")
</pallas_src>

<mosaic_0001>
module attributes {stable_mosaic.version = 11 : i64} {
  func.func @_ae_fused_kernel(%arg0: i32, %arg1: memref<8x32xbf16, #tpu.memory_space<vmem>>, %arg2: memref<32x64xbf16, #tpu.memory_space<vmem>>, %arg3: memref<1x64xf32, #tpu.memory_space<vmem>>, %arg4: memref<64x64xbf16, #tpu.memory_space<vmem>>, %arg5: memref<1x64xf32, #tpu.memory_space<vmem>>, %arg6: memref<64x32xbf16, #tpu.memory_space<vmem>>, %arg7: memref<1x32xf32, #tpu.memory_space<vmem>>, %arg8: memref<32x16xbf16, #tpu.memory_space<vmem>>, %arg9: memref<1x16xf32, #tpu.memory_space<vmem>>, %arg10: memref<16x32xbf16, #tpu.memory_space<vmem>>, %arg11: memref<1x32xf32, #tpu.memory_space<vmem>>, %arg12: memref<32x64xbf16, #tpu.memory_space<vmem>>, %arg13: memref<1x64xf32, #tpu.memory_space<vmem>>, %arg14: memref<64x64xbf16, #tpu.memory_space<vmem>>, %arg15: memref<1x64xf32, #tpu.memory_space<vmem>>, %arg16: memref<64x32xbf16, #tpu.memory_space<vmem>>, %arg17: memref<1x32xf32, #tpu.memory_space<vmem>>, %arg18: memref<8x208xf32, #tpu.memory_space<vmem>>) attributes {dimension_semantics = [#tpu.dimension_semantics<parallel>], iteration_bounds = array<i64: 2>, scalar_prefetch = 0 : i64, scratch_operands = 0 : i64, tpu.core_type = #tpu.core_type<tc>, window_params = [{transform_indices = @transform_0, window_bounds = array<i64: 8, 32>}, {pipeline_mode = #tpu.pipeline_mode<synchronous>, transform_indices = @transform_1, window_bounds = array<i64: 32, 64>}, {pipeline_mode = #tpu.pipeline_mode<synchronous>, transform_indices = @transform_2, window_bounds = array<i64: 1, 64>}, {pipeline_mode = #tpu.pipeline_mode<synchronous>, transform_indices = @transform_3, window_bounds = array<i64: 64, 64>}, {pipeline_mode = #tpu.pipeline_mode<synchronous>, transform_indices = @transform_4, window_bounds = array<i64: 1, 64>}, {pipeline_mode = #tpu.pipeline_mode<synchronous>, transform_indices = @transform_5, window_bounds = array<i64: 64, 32>}, {pipeline_mode = #tpu.pipeline_mode<synchronous>, transform_indices = @transform_6, window_bounds = array<i64: 1, 32>}, {pipeline_mode = #tpu.pipeline_mode<synchronous>, transform_indices = @transform_7, window_bounds = array<i64: 32, 16>}, {pipeline_mode = #tpu.pipeline_mode<synchronous>, transform_indices = @transform_8, window_bounds = array<i64: 1, 16>}, {pipeline_mode = #tpu.pipeline_mode<synchronous>, transform_indices = @transform_9, window_bounds = array<i64: 16, 32>}, {pipeline_mode = #tpu.pipeline_mode<synchronous>, transform_indices = @transform_10, window_bounds = array<i64: 1, 32>}, {pipeline_mode = #tpu.pipeline_mode<synchronous>, transform_indices = @transform_11, window_bounds = array<i64: 32, 64>}, {pipeline_mode = #tpu.pipeline_mode<synchronous>, transform_indices = @transform_12, window_bounds = array<i64: 1, 64>}, {pipeline_mode = #tpu.pipeline_mode<synchronous>, transform_indices = @transform_13, window_bounds = array<i64: 64, 64>}, {pipeline_mode = #tpu.pipeline_mode<synchronous>, transform_indices = @transform_14, window_bounds = array<i64: 1, 64>}, {pipeline_mode = #tpu.pipeline_mode<synchronous>, transform_indices = @transform_15, window_bounds = array<i64: 64, 32>}, {pipeline_mode = #tpu.pipeline_mode<synchronous>, transform_indices = @transform_16, window_bounds = array<i64: 1, 32>}, {transform_indices = @transform_17, window_bounds = array<i64: 8, 208>}]} {
    %c0 = arith.constant 0 : index
    %c0_0 = arith.constant 0 : index
    %0 = vector.load %arg1[%c0, %c0_0] : memref<8x32xbf16, #tpu.memory_space<vmem>>, vector<8x32xbf16>
    %c0_1 = arith.constant 0 : index
    %c0_2 = arith.constant 0 : index
    %1 = vector.load %arg2[%c0_1, %c0_2] : memref<32x64xbf16, #tpu.memory_space<vmem>>, vector<32x64xbf16>
    %c0_3 = arith.constant 0 : index
    %c0_4 = arith.constant 0 : index
    %2 = vector.load %arg3[%c0_3, %c0_4] : memref<1x64xf32, #tpu.memory_space<vmem>>, vector<1x64xf32>
    %cst = arith.constant dense<0.000000e+00> : vector<8x64xf32>
    %3 = tpu.matmul %0, %1, %cst {dimension_numbers = #tpu.dot_dimension_numbers<[1], [0], [0], [1], [0, 0, 1, 1], [], []>} : vector<8x32xbf16>, vector<32x64xbf16>, vector<8x64xf32> -> vector<8x64xf32>
    %4 = vector.broadcast %2 : vector<1x64xf32> to vector<8x64xf32>
    %5 = arith.addf %3, %4 : vector<8x64xf32>
    %cst_5 = arith.constant 0.000000e+00 : f32
    %6 = vector.broadcast %cst_5 : f32 to vector<8x64xf32>
    %7 = arith.maximumf %5, %6 : vector<8x64xf32>
    %c0_6 = arith.constant 0 : index
    %c32 = arith.constant 32 : index
    %8 = vector.load %arg18[%c0_6, %c32] : memref<8x208xf32, #tpu.memory_space<vmem>>, vector<8x64xf32>
    tpu.vector_store %arg18[%c0_6, %c32], %7 {strides = array<i32>} : memref<8x208xf32, #tpu.memory_space<vmem>>, vector<8x64xf32>,
    %c0_7 = arith.constant 0 : index
    %c0_8 = arith.constant 0 : index
    %9 = vector.load %arg4[%c0_7, %c0_8] : memref<64x64xbf16, #tpu.memory_space<vmem>>, vector<64x64xbf16>
    %c0_9 = arith.constant 0 : index
    %c0_10 = arith.constant 0 : index
    %10 = vector.load %arg5[%c0_9, %c0_10] : memref<1x64xf32, #tpu.memory_space<vmem>>, vector<1x64xf32>
    %11 = arith.truncf %7 : vector<8x64xf32> to vector<8x64xbf16>
    %cst_11 = arith.constant dense<0.000000e+00> : vector<8x64xf32>
    %12 = tpu.matmul %11, %9, %cst_11 {dimension_numbers = #tpu.dot_dimension_numbers<[1], [0], [0], [1], [0, 0, 1, 1], [], []>} : vector<8x64xbf16>, vector<64x64xbf16>, vector<8x64xf32> -> vector<8x64xf32>
    %13 = vector.broadcast %10 : vector<1x64xf32> to vector<8x64xf32>
    %14 = arith.addf %12, %13 : vector<8x64xf32>
    %cst_12 = arith.constant 0.000000e+00 : f32
    %15 = vector.broadcast %cst_12 : f32 to vector<8x64xf32>
    %16 = arith.maximumf %14, %15 : vector<8x64xf32>
    %c0_13 = arith.constant 0 : index
    %c96 = arith.constant 96 : index
    %17 = vector.load %arg18[%c0_13, %c96] : memref<8x208xf32, #tpu.memory_space<vmem>>, vector<8x64xf32>
    tpu.vector_store %arg18[%c0_13, %c96], %16 {strides = array<i32>} : memref<8x208xf32, #tpu.memory_space<vmem>>, vector<8x64xf32>,
    %c0_14 = arith.constant 0 : index
    %c0_15 = arith.constant 0 : index
    %18 = vector.load %arg6[%c0_14, %c0_15] : memref<64x32xbf16, #tpu.memory_space<vmem>>, vector<64x32xbf16>
    %c0_16 = arith.constant 0 : index
    %c0_17 = arith.constant 0 : index
    %19 = vector.load %arg7[%c0_16, %c0_17] : memref<1x32xf32, #tpu.memory_space<vmem>>, vector<1x32xf32>
    %20 = arith.truncf %16 : vector<8x64xf32> to vector<8x64xbf16>
    %cst_18 = arith.constant dense<0.000000e+00> : vector<8x32xf32>
    %21 = tpu.matmul %20, %18, %cst_18 {dimension_numbers = #tpu.dot_dimension_numbers<[1], [0], [0], [1], [0, 0, 1, 1], [], []>} : vector<8x64xbf16>, vector<64x32xbf16>, vector<8x32xf32> -> vector<8x32xf32>
    %22 = vector.broadcast %19 : vector<1x32xf32> to vector<8x32xf32>
    %23 = arith.addf %21, %22 : vector<8x32xf32>
    %cst_19 = arith.constant 0.000000e+00 : f32
    %24 = vector.broadcast %cst_19 : f32 to vector<8x32xf32>
    %25 = arith.maximumf %23, %24 : vector<8x32xf32>
    %c0_20 = arith.constant 0 : index
    %c160 = arith.constant 160 : index
    %26 = vector.load %arg18[%c0_20, %c160] : memref<8x208xf32, #tpu.memory_space<vmem>>, vector<8x32xf32>
    tpu.vector_store %arg18[%c0_20, %c160], %25 {strides = array<i32>} : memref<8x208xf32, #tpu.memory_space<vmem>>, vector<8x32xf32>,
    %c0_21 = arith.constant 0 : index
    %c0_22 = arith.constant 0 : index
    %27 = vector.load %arg8[%c0_21, %c0_22] : memref<32x16xbf16, #tpu.memory_space<vmem>>, vector<32x16xbf16>
    %c0_23 = arith.constant 0 : index
    %c0_24 = arith.constant 0 : index
    %28 = vector.load %arg9[%c0_23, %c0_24] : memref<1x16xf32, #tpu.memory_space<vmem>>, vector<1x16xf32>
    %29 = arith.truncf %25 : vector<8x32xf32> to vector<8x32xbf16>
    %cst_25 = arith.constant dense<0.000000e+00> : vector<8x16xf32>
    %30 = tpu.matmul %29, %27, %cst_25 {dimension_numbers = #tpu.dot_dimension_numbers<[1], [0], [0], [1], [0, 0, 1, 1], [], []>} : vector<8x32xbf16>, vector<32x16xbf16>, vector<8x16xf32> -> vector<8x16xf32>
    %31 = vector.broadcast %28 : vector<1x16xf32> to vector<8x16xf32>
    %32 = arith.addf %30, %31 : vector<8x16xf32>
    %c0_26 = arith.constant 0 : index
    %c192 = arith.constant 192 : index
    %33 = vector.load %arg18[%c0_26, %c192] : memref<8x208xf32, #tpu.memory_space<vmem>>, vector<8x16xf32>
    tpu.vector_store %arg18[%c0_26, %c192], %32 {strides = array<i32>} : memref<8x208xf32, #tpu.memory_space<vmem>>, vector<8x16xf32>,
    %c0_27 = arith.constant 0 : index
    %c0_28 = arith.constant 0 : index
    %34 = vector.load %arg10[%c0_27, %c0_28] : memref<16x32xbf16, #tpu.memory_space<vmem>>, vector<16x32xbf16>
    %c0_29 = arith.constant 0 : index
    %c0_30 = arith.constant 0 : index
    %35 = vector.load %arg11[%c0_29, %c0_30] : memref<1x32xf32, #tpu.memory_space<vmem>>, vector<1x32xf32>
    %36 = arith.truncf %32 : vector<8x16xf32> to vector<8x16xbf16>
    %cst_31 = arith.constant dense<0.000000e+00> : vector<8x32xf32>
    %37 = tpu.matmul %36, %34, %cst_31 {dimension_numbers = #tpu.dot_dimension_numbers<[1], [0], [0], [1], [0, 0, 1, 1], [], []>} : vector<8x16xbf16>, vector<16x32xbf16>, vector<8x32xf32> -> vector<8x32xf32>
    %38 = vector.broadcast %35 : vector<1x32xf32> to vector<8x32xf32>
    %39 = arith.addf %37, %38 : vector<8x32xf32>
    %cst_32 = arith.constant 0.000000e+00 : f32
    %40 = vector.broadcast %cst_32 : f32 to vector<8x32xf32>
    %41 = arith.maximumf %39, %40 : vector<8x32xf32>
    %c0_33 = arith.constant 0 : index
    %c0_34 = arith.constant 0 : index
    %42 = vector.load %arg12[%c0_33, %c0_34] : memref<32x64xbf16, #tpu.memory_space<vmem>>, vector<32x64xbf16>
    %c0_35 = arith.constant 0 : index
    %c0_36 = arith.constant 0 : index
    %43 = vector.load %arg13[%c0_35, %c0_36] : memref<1x64xf32, #tpu.memory_space<vmem>>, vector<1x64xf32>
    %44 = arith.truncf %41 : vector<8x32xf32> to vector<8x32xbf16>
    %cst_37 = arith.constant dense<0.000000e+00> : vector<8x64xf32>
    %45 = tpu.matmul %44, %42, %cst_37 {dimension_numbers = #tpu.dot_dimension_numbers<[1], [0], [0], [1], [0, 0, 1, 1], [], []>} : vector<8x32xbf16>, vector<32x64xbf16>, vector<8x64xf32> -> vector<8x64xf32>
    %46 = vector.broadcast %43 : vector<1x64xf32> to vector<8x64xf32>
    %47 = arith.addf %45, %46 : vector<8x64xf32>
    %cst_38 = arith.constant 0.000000e+00 : f32
    %48 = vector.broadcast %cst_38 : f32 to vector<8x64xf32>
    %49 = arith.maximumf %47, %48 : vector<8x64xf32>
    %c0_39 = arith.constant 0 : index
    %c0_40 = arith.constant 0 : index
    %50 = vector.load %arg14[%c0_39, %c0_40] : memref<64x64xbf16, #tpu.memory_space<vmem>>, vector<64x64xbf16>
    %c0_41 = arith.constant 0 : index
    %c0_42 = arith.constant 0 : index
    %51 = vector.load %arg15[%c0_41, %c0_42] : memref<1x64xf32, #tpu.memory_space<vmem>>, vector<1x64xf32>
    %52 = arith.truncf %49 : vector<8x64xf32> to vector<8x64xbf16>
    %cst_43 = arith.constant dense<0.000000e+00> : vector<8x64xf32>
    %53 = tpu.matmul %52, %50, %cst_43 {dimension_numbers = #tpu.dot_dimension_numbers<[1], [0], [0], [1], [0, 0, 1, 1], [], []>} : vector<8x64xbf16>, vector<64x64xbf16>, vector<8x64xf32> -> vector<8x64xf32>
    %54 = vector.broadcast %51 : vector<1x64xf32> to vector<8x64xf32>
    %55 = arith.addf %53, %54 : vector<8x64xf32>
    %cst_44 = arith.constant 0.000000e+00 : f32
    %56 = vector.broadcast %cst_44 : f32 to vector<8x64xf32>
    %57 = arith.maximumf %55, %56 : vector<8x64xf32>
    %c0_45 = arith.constant 0 : index
    %c0_46 = arith.constant 0 : index
    %58 = vector.load %arg16[%c0_45, %c0_46] : memref<64x32xbf16, #tpu.memory_space<vmem>>, vector<64x32xbf16>
    %c0_47 = arith.constant 0 : index
    %c0_48 = arith.constant 0 : index
    %59 = vector.load %arg17[%c0_47, %c0_48] : memref<1x32xf32, #tpu.memory_space<vmem>>, vector<1x32xf32>
    %60 = arith.truncf %57 : vector<8x64xf32> to vector<8x64xbf16>
    %cst_49 = arith.constant dense<0.000000e+00> : vector<8x32xf32>
    %61 = tpu.matmul %60, %58, %cst_49 {dimension_numbers = #tpu.dot_dimension_numbers<[1], [0], [0], [1], [0, 0, 1, 1], [], []>} : vector<8x64xbf16>, vector<64x32xbf16>, vector<8x32xf32> -> vector<8x32xf32>
    %62 = vector.broadcast %59 : vector<1x32xf32> to vector<8x32xf32>
    %63 = arith.addf %61, %62 : vector<8x32xf32>
    %c0_50 = arith.constant 0 : index
    %c0_51 = arith.constant 0 : index
    %64 = vector.load %arg18[%c0_50, %c0_51] : memref<8x208xf32, #tpu.memory_space<vmem>>, vector<8x32xf32>
    tpu.vector_store %arg18[%c0_50, %c0_51], %63 {strides = array<i32>} : memref<8x208xf32, #tpu.memory_space<vmem>>, vector<8x32xf32>,
    return
  }
  func.func @transform_0(%arg0: i32) -> (i32, i32) {
    %c0_i32 = arith.constant 0 : i32
    %c0_i32_0 = arith.constant 0 : i32
    return %arg0, %c0_i32 : i32, i32
  }
  func.func @transform_1(%arg0: i32) -> (i32, i32) {
    %c0_i32 = arith.constant 0 : i32
    %c0_i32_0 = arith.constant 0 : i32
    %c0_i32_1 = arith.constant 0 : i32
    return %c0_i32, %c0_i32_0 : i32, i32
  }
  func.func @transform_2(%arg0: i32) -> (i32, i32) {
    %c0_i32 = arith.constant 0 : i32
    %c0_i32_0 = arith.constant 0 : i32
    %c0_i32_1 = arith.constant 0 : i32
    return %c0_i32, %c0_i32_0 : i32, i32
  }
  func.func @transform_3(%arg0: i32) -> (i32, i32) {
    %c0_i32 = arith.constant 0 : i32
    %c0_i32_0 = arith.constant 0 : i32
    %c0_i32_1 = arith.constant 0 : i32
    return %c0_i32, %c0_i32_0 : i32, i32
  }
  func.func @transform_4(%arg0: i32) -> (i32, i32) {
    %c0_i32 = arith.constant 0 : i32
    %c0_i32_0 = arith.constant 0 : i32
    %c0_i32_1 = arith.constant 0 : i32
    return %c0_i32, %c0_i32_0 : i32, i32
  }
  func.func @transform_5(%arg0: i32) -> (i32, i32) {
    %c0_i32 = arith.constant 0 : i32
    %c0_i32_0 = arith.constant 0 : i32
    %c0_i32_1 = arith.constant 0 : i32
    return %c0_i32, %c0_i32_0 : i32, i32
  }
  func.func @transform_6(%arg0: i32) -> (i32, i32) {
    %c0_i32 = arith.constant 0 : i32
    %c0_i32_0 = arith.constant 0 : i32
    %c0_i32_1 = arith.constant 0 : i32
    return %c0_i32, %c0_i32_0 : i32, i32
  }
  func.func @transform_7(%arg0: i32) -> (i32, i32) {
    %c0_i32 = arith.constant 0 : i32
    %c0_i32_0 = arith.constant 0 : i32
    %c0_i32_1 = arith.constant 0 : i32
    return %c0_i32, %c0_i32_0 : i32, i32
  }
  func.func @transform_8(%arg0: i32) -> (i32, i32) {
    %c0_i32 = arith.constant 0 : i32
    %c0_i32_0 = arith.constant 0 : i32
    %c0_i32_1 = arith.constant 0 : i32
    return %c0_i32, %c0_i32_0 : i32, i32
  }
  func.func @transform_9(%arg0: i32) -> (i32, i32) {
    %c0_i32 = arith.constant 0 : i32
    %c0_i32_0 = arith.constant 0 : i32
    %c0_i32_1 = arith.constant 0 : i32
    return %c0_i32, %c0_i32_0 : i32, i32
  }
  func.func @transform_10(%arg0: i32) -> (i32, i32) {
    %c0_i32 = arith.constant 0 : i32
    %c0_i32_0 = arith.constant 0 : i32
    %c0_i32_1 = arith.constant 0 : i32
    return %c0_i32, %c0_i32_0 : i32, i32
  }
  func.func @transform_11(%arg0: i32) -> (i32, i32) {
    %c0_i32 = arith.constant 0 : i32
    %c0_i32_0 = arith.constant 0 : i32
    %c0_i32_1 = arith.constant 0 : i32
    return %c0_i32, %c0_i32_0 : i32, i32
  }
  func.func @transform_12(%arg0: i32) -> (i32, i32) {
    %c0_i32 = arith.constant 0 : i32
    %c0_i32_0 = arith.constant 0 : i32
    %c0_i32_1 = arith.constant 0 : i32
    return %c0_i32, %c0_i32_0 : i32, i32
  }
  func.func @transform_13(%arg0: i32) -> (i32, i32) {
    %c0_i32 = arith.constant 0 : i32
    %c0_i32_0 = arith.constant 0 : i32
    %c0_i32_1 = arith.constant 0 : i32
    return %c0_i32, %c0_i32_0 : i32, i32
  }
  func.func @transform_14(%arg0: i32) -> (i32, i32) {
    %c0_i32 = arith.constant 0 : i32
    %c0_i32_0 = arith.constant 0 : i32
    %c0_i32_1 = arith.constant 0 : i32
    return %c0_i32, %c0_i32_0 : i32, i32
  }
  func.func @transform_15(%arg0: i32) -> (i32, i32) {
    %c0_i32 = arith.constant 0 : i32
    %c0_i32_0 = arith.constant 0 : i32
    %c0_i32_1 = arith.constant 0 : i32
    return %c0_i32, %c0_i32_0 : i32, i32
  }
  func.func @transform_16(%arg0: i32) -> (i32, i32) {
    %c0_i32 = arith.constant 0 : i32
    %c0_i32_0 = arith.constant 0 : i32
    %c0_i32_1 = arith.constant 0 : i32
    return %c0_i32, %c0_i32_0 : i32, i32
  }
  func.func @transform_17(%arg0: i32) -> (i32, i32) {
    %c0_i32 = arith.constant 0 : i32
    %c0_i32_0 = arith.constant 0 : i32
    return %arg0, %c0_i32 : i32, i32
  }
}

module attributes {stable_mosaic.version = 11 : i64} {
  func.func @_ae_fused_kernel(%arg0: i32, %arg1: memref<8x32xbf16, #tpu.memory_space<vmem>>, %arg2: memref<32x64xbf16, #tpu.memory_space<vmem>>, %arg3: memref<1x64xf32, #tpu.memory_space<vmem>>, %arg4: memref<64x64xbf16, #tpu.memory_space<vmem>>, %arg5: memref<1x64xf32, #tpu.memory_space<vmem>>, %arg6: memref<64x32xbf16, #tpu.memory_space<vmem>>, %arg7: memref<1x32xf32, #tpu.memory_space<vmem>>, %arg8: memref<32x16xbf16, #tpu.memory_space<vmem>>, %arg9: memref<1x16xf32, #tpu.memory_space<vmem>>, %arg10: memref<16x32xbf16, #tpu.memory_space<vmem>>, %arg11: memref<1x32xf32, #tpu.memory_space<vmem>>, %arg12: memref<32x64xbf16, #tpu.memory_space<vmem>>, %arg13: memref<1x64xf32, #tpu.memory_space<vmem>>, %arg14: memref<64x64xbf16, #tpu.memory_space<vmem>>, %arg15: memref<1x64xf32, #tpu.memory_space<vmem>>, %arg16: memref<64x32xbf16, #tpu.memory_space<vmem>>, %arg17: memref<1x32xf32, #tpu.memory_space<vmem>>, %arg18: memref<8x208xf32, #tpu.memory_space<vmem>>) attributes {dimension_semantics = [#tpu.dimension_semantics<parallel>], iteration_bounds = array<i64: 2>, scalar_prefetch = 0 : i64, scratch_operands = 0 : i64, tpu.core_type = #tpu.core_type<tc>, window_params = [{transform_indices = @transform_0, window_bounds = array<i64: 8, 32>}, {pipeline_mode = #tpu.pipeline_mode<synchronous>, transform_indices = @transform_1, window_bounds = array<i64: 32, 64>}, {pipeline_mode = #tpu.pipeline_mode<synchronous>, transform_indices = @transform_2, window_bounds = array<i64: 1, 64>}, {pipeline_mode = #tpu.pipeline_mode<synchronous>, transform_indices = @transform_3, window_bounds = array<i64: 64, 64>}, {pipeline_mode = #tpu.pipeline_mode<synchronous>, transform_indices = @transform_4, window_bounds = array<i64: 1, 64>}, {pipeline_mode = #tpu.pipeline_mode<synchronous>, transform_indices = @transform_5, window_bounds = array<i64: 64, 32>}, {pipeline_mode = #tpu.pipeline_mode<synchronous>, transform_indices = @transform_6, window_bounds = array<i64: 1, 32>}, {pipeline_mode = #tpu.pipeline_mode<synchronous>, transform_indices = @transform_7, window_bounds = array<i64: 32, 16>}, {pipeline_mode = #tpu.pipeline_mode<synchronous>, transform_indices = @transform_8, window_bounds = array<i64: 1, 16>}, {pipeline_mode = #tpu.pipeline_mode<synchronous>, transform_indices = @transform_9, window_bounds = array<i64: 16, 32>}, {pipeline_mode = #tpu.pipeline_mode<synchronous>, transform_indices = @transform_10, window_bounds = array<i64: 1, 32>}, {pipeline_mode = #tpu.pipeline_mode<synchronous>, transform_indices = @transform_11, window_bounds = array<i64: 32, 64>}, {pipeline_mode = #tpu.pipeline_mode<synchronous>, transform_indices = @transform_12, window_bounds = array<i64: 1, 64>}, {pipeline_mode = #tpu.pipeline_mode<synchronous>, transform_indices = @transform_13, window_bounds = array<i64: 64, 64>}, {pipeline_mode = #tpu.pipeline_mode<synchronous>, transform_indices = @transform_14, window_bounds = array<i64: 1, 64>}, {pipeline_mode = #tpu.pipeline_mode<synchronous>, transform_indices = @transform_15, window_bounds = array<i64: 64, 32>}, {pipeline_mode = #tpu.pipeline_mode<synchronous>, transform_indices = @transform_16, window_bounds = array<i64: 1, 32>}, {transform_indices = @transform_17, window_bounds = array<i64: 8, 208>}]} {
    %c0 = arith.constant 0 : index
    %c0_0 = arith.constant 0 : index
    %0 = vector.load %arg1[%c0, %c0_0] : memref<8x32xbf16, #tpu.memory_space<vmem>>, vector<8x32xbf16>
    %c0_1 = arith.constant 0 : index
    %c0_2 = arith.constant 0 : index
    %1 = vector.load %arg2[%c0_1, %c0_2] : memref<32x64xbf16, #tpu.memory_space<vmem>>, vector<32x64xbf16>
    %c0_3 = arith.constant 0 : index
    %c0_4 = arith.constant 0 : index
    %2 = vector.load %arg3[%c0_3, %c0_4] : memref<1x64xf32, #tpu.memory_space<vmem>>, vector<1x64xf32>
    %cst = arith.constant dense<0.000000e+00> : vector<8x64xf32>
    %3 = tpu.matmul %0, %1, %cst {dimension_numbers = #tpu.dot_dimension_numbers<[1], [0], [0], [1], [0, 0, 1, 1], [], []>} : vector<8x32xbf16>, vector<32x64xbf16>, vector<8x64xf32> -> vector<8x64xf32>
    %4 = vector.broadcast %2 : vector<1x64xf32> to vector<8x64xf32>
    %5 = arith.addf %3, %4 : vector<8x64xf32>
    %cst_5 = arith.constant 0.000000e+00 : f32
    %6 = vector.broadcast %cst_5 : f32 to vector<8x64xf32>
    %7 = arith.maximumf %5, %6 : vector<8x64xf32>
    %c0_6 = arith.constant 0 : index
    %c32 = arith.constant 32 : index
    %8 = vector.load %arg18[%c0_6, %c32] : memref<8x208xf32, #tpu.memory_space<vmem>>, vector<8x64xf32>
    tpu.vector_store %arg18[%c0_6, %c32], %7 {strides = array<i32>} : memref<8x208xf32, #tpu.memory_space<vmem>>, vector<8x64xf32>,
    %c0_7 = arith.constant 0 : index
    %c0_8 = arith.constant 0 : index
    %9 = vector.load %arg4[%c0_7, %c0_8] : memref<64x64xbf16, #tpu.memory_space<vmem>>, vector<64x64xbf16>
    %c0_9 = arith.constant 0 : index
    %c0_10 = arith.constant 0 : index
    %10 = vector.load %arg5[%c0_9, %c0_10] : memref<1x64xf32, #tpu.memory_space<vmem>>, vector<1x64xf32>
    %11 = arith.truncf %7 : vector<8x64xf32> to vector<8x64xbf16>
    %cst_11 = arith.constant dense<0.000000e+00> : vector<8x64xf32>
    %12 = tpu.matmul %11, %9, %cst_11 {dimension_numbers = #tpu.dot_dimension_numbers<[1], [0], [0], [1], [0, 0, 1, 1], [], []>} : vector<8x64xbf16>, vector<64x64xbf16>, vector<8x64xf32> -> vector<8x64xf32>
    %13 = vector.broadcast %10 : vector<1x64xf32> to vector<8x64xf32>
    %14 = arith.addf %12, %13 : vector<8x64xf32>
    %cst_12 = arith.constant 0.000000e+00 : f32
    %15 = vector.broadcast %cst_12 : f32 to vector<8x64xf32>
    %16 = arith.maximumf %14, %15 : vector<8x64xf32>
    %c0_13 = arith.constant 0 : index
    %c96 = arith.constant 96 : index
    %17 = vector.load %arg18[%c0_13, %c96] : memref<8x208xf32, #tpu.memory_space<vmem>>, vector<8x64xf32>
    tpu.vector_store %arg18[%c0_13, %c96], %16 {strides = array<i32>} : memref<8x208xf32, #tpu.memory_space<vmem>>, vector<8x64xf32>,
    %c0_14 = arith.constant 0 : index
    %c0_15 = arith.constant 0 : index
    %18 = vector.load %arg6[%c0_14, %c0_15] : memref<64x32xbf16, #tpu.memory_space<vmem>>, vector<64x32xbf16>
    %c0_16 = arith.constant 0 : index
    %c0_17 = arith.constant 0 : index
    %19 = vector.load %arg7[%c0_16, %c0_17] : memref<1x32xf32, #tpu.memory_space<vmem>>, vector<1x32xf32>
    %20 = arith.truncf %16 : vector<8x64xf32> to vector<8x64xbf16>
    %cst_18 = arith.constant dense<0.000000e+00> : vector<8x32xf32>
    %21 = tpu.matmul %20, %18, %cst_18 {dimension_numbers = #tpu.dot_dimension_numbers<[1], [0], [0], [1], [0, 0, 1, 1], [], []>} : vector<8x64xbf16>, vector<64x32xbf16>, vector<8x32xf32> -> vector<8x32xf32>
    %22 = vector.broadcast %19 : vector<1x32xf32> to vector<8x32xf32>
    %23 = arith.addf %21, %22 : vector<8x32xf32>
    %cst_19 = arith.constant 0.000000e+00 : f32
    %24 = vector.broadcast %cst_19 : f32 to vector<8x32xf32>
    %25 = arith.maximumf %23, %24 : vector<8x32xf32>
    %c0_20 = arith.constant 0 : index
    %c160 = arith.constant 160 : index
    %26 = vector.load %arg18[%c0_20, %c160] : memref<8x208xf32, #tpu.memory_space<vmem>>, vector<8x32xf32>
    tpu.vector_store %arg18[%c0_20, %c160], %25 {strides = array<i32>} : memref<8x208xf32, #tpu.memory_space<vmem>>, vector<8x32xf32>,
    %c0_21 = arith.constant 0 : index
    %c0_22 = arith.constant 0 : index
    %27 = vector.load %arg8[%c0_21, %c0_22] : memref<32x16xbf16, #tpu.memory_space<vmem>>, vector<32x16xbf16>
    %c0_23 = arith.constant 0 : index
    %c0_24 = arith.constant 0 : index
    %28 = vector.load %arg9[%c0_23, %c0_24] : memref<1x16xf32, #tpu.memory_space<vmem>>, vector<1x16xf32>
    %29 = arith.truncf %25 : vector<8x32xf32> to vector<8x32xbf16>
    %cst_25 = arith.constant dense<0.000000e+00> : vector<8x16xf32>
    %30 = tpu.matmul %29, %27, %cst_25 {dimension_numbers = #tpu.dot_dimension_numbers<[1], [0], [0], [1], [0, 0, 1, 1], [], []>} : vector<8x32xbf16>, vector<32x16xbf16>, vector<8x16xf32> -> vector<8x16xf32>
    %31 = vector.broadcast %28 : vector<1x16xf32> to vector<8x16xf32>
    %32 = arith.addf %30, %31 : vector<8x16xf32>
    %c0_26 = arith.constant 0 : index
    %c192 = arith.constant 192 : index
    %33 = vector.load %arg18[%c0_26, %c192] : memref<8x208xf32, #tpu.memory_space<vmem>>, vector<8x16xf32>
    tpu.vector_store %arg18[%c0_26, %c192], %32 {strides = array<i32>} : memref<8x208xf32, #tpu.memory_space<vmem>>, vector<8x16xf32>,
    %c0_27 = arith.constant 0 : index
    %c0_28 = arith.constant 0 : index
    %34 = vector.load %arg10[%c0_27, %c0_28] : memref<16x32xbf16, #tpu.memory_space<vmem>>, vector<16x32xbf16>
    %c0_29 = arith.constant 0 : index
    %c0_30 = arith.constant 0 : index
    %35 = vector.load %arg11[%c0_29, %c0_30] : memref<1x32xf32, #tpu.memory_space<vmem>>, vector<1x32xf32>
    %36 = arith.truncf %32 : vector<8x16xf32> to vector<8x16xbf16>
    %cst_31 = arith.constant dense<0.000000e+00> : vector<8x32xf32>
    %37 = tpu.matmul %36, %34, %cst_31 {dimension_numbers = #tpu.dot_dimension_numbers<[1], [0], [0], [1], [0, 0, 1, 1], [], []>} : vector<8x16xbf16>, vector<16x32xbf16>, vector<8x32xf32> -> vector<8x32xf32>
    %38 = vector.broadcast %35 : vector<1x32xf32> to vector<8x32xf32>
    %39 = arith.addf %37, %38 : vector<8x32xf32>
    %cst_32 = arith.constant 0.000000e+00 : f32
    %40 = vector.broadcast %cst_32 : f32 to vector<8x32xf32>
    %41 = arith.maximumf %39, %40 : vector<8x32xf32>
    %c0_33 = arith.constant 0 : index
    %c0_34 = arith.constant 0 : index
    %42 = vector.load %arg12[%c0_33, %c0_34] : memref<32x64xbf16, #tpu.memory_space<vmem>>, vector<32x64xbf16>
    %c0_35 = arith.constant 0 : index
    %c0_36 = arith.constant 0 : index
    %43 = vector.load %arg13[%c0_35, %c0_36] : memref<1x64xf32, #tpu.memory_space<vmem>>, vector<1x64xf32>
    %44 = arith.truncf %41 : vector<8x32xf32> to vector<8x32xbf16>
    %cst_37 = arith.constant dense<0.000000e+00> : vector<8x64xf32>
    %45 = tpu.matmul %44, %42, %cst_37 {dimension_numbers = #tpu.dot_dimension_numbers<[1], [0], [0], [1], [0, 0, 1, 1], [], []>} : vector<8x32xbf16>, vector<32x64xbf16>, vector<8x64xf32> -> vector<8x64xf32>
    %46 = vector.broadcast %43 : vector<1x64xf32> to vector<8x64xf32>
    %47 = arith.addf %45, %46 : vector<8x64xf32>
    %cst_38 = arith.constant 0.000000e+00 : f32
    %48 = vector.broadcast %cst_38 : f32 to vector<8x64xf32>
    %49 = arith.maximumf %47, %48 : vector<8x64xf32>
    %c0_39 = arith.constant 0 : index
    %c0_40 = arith.constant 0 : index
    %50 = vector.load %arg14[%c0_39, %c0_40] : memref<64x64xbf16, #tpu.memory_space<vmem>>, vector<64x64xbf16>
    %c0_41 = arith.constant 0 : index
    %c0_42 = arith.constant 0 : index
    %51 = vector.load %arg15[%c0_41, %c0_42] : memref<1x64xf32, #tpu.memory_space<vmem>>, vector<1x64xf32>
    %52 = arith.truncf %49 : vector<8x64xf32> to vector<8x64xbf16>
    %cst_43 = arith.constant dense<0.000000e+00> : vector<8x64xf32>
    %53 = tpu.matmul %52, %50, %cst_43 {dimension_numbers = #tpu.dot_dimension_numbers<[1], [0], [0], [1], [0, 0, 1, 1], [], []>} : vector<8x64xbf16>, vector<64x64xbf16>, vector<8x64xf32> -> vector<8x64xf32>
    %54 = vector.broadcast %51 : vector<1x64xf32> to vector<8x64xf32>
    %55 = arith.addf %53, %54 : vector<8x64xf32>
    %cst_44 = arith.constant 0.000000e+00 : f32
    %56 = vector.broadcast %cst_44 : f32 to vector<8x64xf32>
    %57 = arith.maximumf %55, %56 : vector<8x64xf32>
    %c0_45 = arith.constant 0 : index
    %c0_46 = arith.constant 0 : index
    %58 = vector.load %arg16[%c0_45, %c0_46] : memref<64x32xbf16, #tpu.memory_space<vmem>>, vector<64x32xbf16>
    %c0_47 = arith.constant 0 : index
    %c0_48 = arith.constant 0 : index
    %59 = vector.load %arg17[%c0_47, %c0_48] : memref<1x32xf32, #tpu.memory_space<vmem>>, vector<1x32xf32>
    %60 = arith.truncf %57 : vector<8x64xf32> to vector<8x64xbf16>
    %cst_49 = arith.constant dense<0.000000e+00> : vector<8x32xf32>
    %61 = tpu.matmul %60, %58, %cst_49 {dimension_numbers = #tpu.dot_dimension_numbers<[1], [0], [0], [1], [0, 0, 1, 1], [], []>} : vector<8x64xbf16>, vector<64x32xbf16>, vector<8x32xf32> -> vector<8x32xf32>
    %62 = vector.broadcast %59 : vector<1x32xf32> to vector<8x32xf32>
    %63 = arith.addf %61, %62 : vector<8x32xf32>
    %c0_50 = arith.constant 0 : index
    %c0_51 = arith.constant 0 : index
    %64 = vector.load %arg18[%c0_50, %c0_51] : memref<8x208xf32, #tpu.memory_space<vmem>>, vector<8x32xf32>
    tpu.vector_store %arg18[%c0_50, %c0_51], %63 {strides = array<i32>} : memref<8x208xf32, #tpu.memory_space<vmem>>, vector<8x32xf32>,
    return
  }
  func.func @transform_0(%arg0: i32) -> (i32, i32) {
    %c0_i32 = arith.constant 0 : i32
    %c0_i32_0 = arith.constant 0 : i32
    return %arg0, %c0_i32 : i32, i32
  }
  func.func @transform_1(%arg0: i32) -> (i32, i32) {
    %c0_i32 = arith.constant 0 : i32
    %c0_i32_0 = arith.constant 0 : i32
    %c0_i32_1 = arith.constant 0 : i32
    return %c0_i32, %c0_i32_0 : i32, i32
  }
  func.func @transform_2(%arg0: i32) -> (i32, i32) {
    %c0_i32 = arith.constant 0 : i32
    %c0_i32_0 = arith.constant 0 : i32
    %c0_i32_1 = arith.constant 0 : i32
    return %c0_i32, %c0_i32_0 : i32, i32
  }
  func.func @transform_3(%arg0: i32) -> (i32, i32) {
    %c0_i32 = arith.constant 0 : i32
    %c0_i32_0 = arith.constant 0 : i32
    %c0_i32_1 = arith.constant 0 : i32
    return %c0_i32, %c0_i32_0 : i32, i32
  }
  func.func @transform_4(%arg0: i32) -> (i32, i32) {
    %c0_i32 = arith.constant 0 : i32
    %c0_i32_0 = arith.constant 0 : i32
    %c0_i32_1 = arith.constant 0 : i32
    return %c0_i32, %c0_i32_0 : i32, i32
  }
  func.func @transform_5(%arg0: i32) -> (i32, i32) {
    %c0_i32 = arith.constant 0 : i32
    %c0_i32_0 = arith.constant 0 : i32
    %c0_i32_1 = arith.constant 0 : i32
    return %c0_i32, %c0_i32_0 : i32, i32
  }
  func.func @transform_6(%arg0: i32) -> (i32, i32) {
    %c0_i32 = arith.constant 0 : i32
    %c0_i32_0 = arith.constant 0 : i32
    %c0_i32_1 = arith.constant 0 : i32
    return %c0_i32, %c0_i32_0 : i32, i32
  }
  func.func @transform_7(%arg0: i32) -> (i32, i32) {
    %c0_i32 = arith.constant 0 : i32
    %c0_i32_0 = arith.constant 0 : i32
    %c0_i32_1 = arith.constant 0 : i32
    return %c0_i32, %c0_i32_0 : i32, i32
  }
  func.func @transform_8(%arg0: i32) -> (i32, i32) {
    %c0_i32 = arith.constant 0 : i32
    %c0_i32_0 = arith.constant 0 : i32
    %c0_i32_1 = arith.constant 0 : i32
    return %c0_i32, %c0_i32_0 : i32, i32
  }
  func.func @transform_9(%arg0: i32) -> (i32, i32) {
    %c0_i32 = arith.constant 0 : i32
    %c0_i32_0 = arith.constant 0 : i32
    %c0_i32_1 = arith.constant 0 : i32
    return %c0_i32, %c0_i32_0 : i32, i32
  }
  func.func @transform_10(%arg0: i32) -> (i32, i32) {
    %c0_i32 = arith.constant 0 : i32
    %c0_i32_0 = arith.constant 0 : i32
    %c0_i32_1 = arith.constant 0 : i32
    return %c0_i32, %c0_i32_0 : i32, i32
  }
  func.func @transform_11(%arg0: i32) -> (i32, i32) {
    %c0_i32 = arith.constant 0 : i32
    %c0_i32_0 = arith.constant 0 : i32
    %c0_i32_1 = arith.constant 0 : i32
    return %c0_i32, %c0_i32_0 : i32, i32
  }
  func.func @transform_12(%arg0: i32) -> (i32, i32) {
    %c0_i32 = arith.constant 0 : i32
    %c0_i32_0 = arith.constant 0 : i32
    %c0_i32_1 = arith.constant 0 : i32
    return %c0_i32, %c0_i32_0 : i32, i32
  }
  func.func @transform_13(%arg0: i32) -> (i32, i32) {
    %c0_i32 = arith.constant 0 : i32
    %c0_i32_0 = arith.constant 0 : i32
    %c0_i32_1 = arith.constant 0 : i32
    return %c0_i32, %c0_i32_0 : i32, i32
  }
  func.func @transform_14(%arg0: i32) -> (i32, i32) {
    %c0_i32 = arith.constant 0 : i32
    %c0_i32_0 = arith.constant 0 : i32
    %c0_i32_1 = arith.constant 0 : i32
    return %c0_i32, %c0_i32_0 : i32, i32
  }
  func.func @transform_15(%arg0: i32) -> (i32, i32) {
    %c0_i32 = arith.constant 0 : i32
    %c0_i32_0 = arith.constant 0 : i32
    %c0_i32_1 = arith.constant 0 : i32
    return %c0_i32, %c0_i32_0 : i32, i32
  }
  func.func @transform_16(%arg0: i32) -> (i32, i32) {
    %c0_i32 = arith.constant 0 : i32
    %c0_i32_0 = arith.constant 0 : i32
    %c0_i32_1 = arith.constant 0 : i32
    return %c0_i32, %c0_i32_0 : i32, i32
  }
  func.func @transform_17(%arg0: i32) -> (i32, i32) {
    %c0_i32 = arith.constant 0 : i32
    %c0_i32_0 = arith.constant 0 : i32
    return %arg0, %c0_i32 : i32, i32
  }
}

</mosaic_0001>

<bundles_post_ra>
// kernel: tpu_custom_call.1
= control target key start
LH: loop header
LB: loop body
LE: loop exit
PB: predicated region body
PF: predicated region fallthrough
CT: control target
= control target key end

     0   :  { %s2128_s0 = inlined_call_operand.hbm [shape: bf16[16,32], index: 0, kind: input, shape index: {}]   ;;  %s2129_s1 = inlined_call_operand.vmem [shape: bf16[32,64], index: 1, kind: input, shape index: {}]   ;;  %s2130_s2 = inlined_call_operand.vmem [shape: f32[1,64], index: 2, kind: input, shape index: {}]   ;;  %s2131_s3 = inlined_call_operand.vmem [shape: bf16[64,64], index: 3, kind: input, shape index: {}]   ;;  %s2132_s4 = inlined_call_operand.vmem [shape: f32[1,64], index: 4, kind: input, shape index: {}]   ;;  %s2133_s5 = inlined_call_operand.vmem [shape: bf16[64,32], index: 5, kind: input, shape index: {}]   ;;  %s2134_s6 = inlined_call_operand.hbm [shape: f32[1,32], index: 6, kind: input, shape index: {}]   ;;  %s2135_s7 = inlined_call_operand.vmem [shape: bf16[32,16], index: 7, kind: input, shape index: {}]   ;;  %s2136_s8 = inlined_call_operand.vmem [shape: f32[1,16], index: 8, kind: input, shape index: {}]   ;;  %s2137_s9 = inlined_call_operand.vmem [shape: bf16[16,32], index: 9, kind: input, shape index: {}]   ;;  %s2138_s10 = inlined_call_operand.vmem [shape: f32[1,32], index: 10, kind: input, shape index: {}]   ;;  %s2139_s11 = inlined_call_operand.vmem [shape: bf16[32,64], index: 11, kind: input, shape index: {}]   ;;  %s2140_s12 = inlined_call_operand.vmem [shape: f32[1,64], index: 12, kind: input, shape index: {}]   ;;  %s2141_s13 = inlined_call_operand.vmem [shape: bf16[64,64], index: 13, kind: input, shape index: {}]   ;;  %s2142_s14 = inlined_call_operand.vmem [shape: f32[1,64], index: 14, kind: input, shape index: {}]   ;;  %s2143_s15 = inlined_call_operand.vmem [shape: bf16[64,32], index: 15, kind: input, shape index: {}]   ;;  %s2144_s16 = inlined_call_operand.vmem [shape: f32[1,32], index: 16, kind: input, shape index: {}]   ;;  %s2145_s17 = inlined_call_operand.hbm [shape: f32[16,208], index: 17, kind: output, shape index: {}]  }
   0x1   :  { %2156 = sst [smem:[#allocation15_spill]] %s2128_s0 }
   0x2   :  { %2157 = sst [smem:[#allocation16_spill]] %s2129_s1 }
   0x3   :  { %2158 = sst [smem:[#allocation17_spill]] %s2134_s6 }
   0x4   :  { %2159 = sst [smem:[#allocation18_spill]] %s2142_s14 }
   0x5   :  { %2160 = sst [smem:[#allocation19_spill]] %s2144_s16 }
   0x6   :  { %2161 = sst [smem:[#allocation20_spill]] %s2145_s17 }
   0x7   :  { %22 = vsyncpa [#allocation3], 0 }
   0x8   :  { %24 = vsyncpa [#allocation3 + $0x1], 0 }
   0x9   :  { %25 = vsyncpa [#allocation6], 0 }
   0xa   :  { %26 = vsyncpa [#allocation4], 0 }
   0xb   :  { %28 = vsyncpa [#allocation4 + $0x1], 0  ;;  %s1777_s24 = smov 0   ;;  %s1779_s25 = smov 0  }
   0xc   :  { %s1781_s26 = smov 0   ;;  %s1783_s27 = smov 0  }
   0xd LB: > { %2162 = sst [smem:[#allocation11_spill]] %s1665_s24  ;;  %s1798_s28 = sadd.s32 4294967295, %s1677_s27   ;;  %s1677_s27 = sphi %s1783_s27, %s2191_s27   ;;  %s1673_s26 = sphi %s1781_s26, %s2195_s26   ;;  %s1669_s25 = sphi %s1779_s25, %s2194_s25   ;;  %s1665_s24 = sphi %s1777_s24, %s2193_s24  }
   0xe   : > { %s1300_s29 = sadd.s32 4294967294, %s1677_s27   ;;  %p54_p0 = scmp.ne.s32.totalorder %s1669_s25, %s1665_s24 }
   0xf   : > { %p2153_p1 = scmp.eq.s32.totalorder %s1798_s28, 0  ;;  %p420_p3 = scmp.eq.s32.totalorder %s1300_s29, 1 }
  0x10   : > { %p1301_p5 = scmp.ge.s32.totalorder %s1677_s27, 1  ;;  %p427_p7 = scmp.lt.s32.totalorder %s1677_s27, 3 }
  0x11   : > { %p1807_p4 = por %p2153_p1, %p54_p0  ;;  %p1812_p6 = por %p420_p3, %p54_p0 }
  0x12   : > { %p1817_p8 = pnand %p1301_p5, %p427_p7  ;;  %s1679_s19 = smov [#allocation5]  }
  0x13   : > { %s2163_s0 = scalar_select %p1807_p4, 1, 0 }
  0x14   : > { %s2164_s30 = scalar_select %p1812_p6, 1, 0 }
  0x15   : > { %s2166_s18 = scalar_select %p1817_p8, 1, 0 }
  0x16   : > { %2165 = sst [smem:[#allocation12_spill]] %s2164_s30  ;;  %s455_s1 = sshll.u32 %s1679_s19, 4  ;;  %s456_s1 = int_to_ptr.vmem [resolvable:$true] %s455_s1 }
  0x17   : > { %p1472_p10 = pneg %p1817_p8  ;;  %s1825_s20 = sadd.s32 1, %s1677_s27  }
  0x18   : > { %2167 = sst [smem:[#allocation13_spill]] %s1825_s20  ;;  %s38_s22 = ssub.s32 %s1677_s27, %s1825_s20 }
  0x19   : > { %p1829_p11 = pnand %p1472_p10, %p2153_p1  ;;  %p1835_p12 = scmp.eq.s32.totalorder %s38_s22, 0 }
  0x1a   : > { %s41_s29 = sadd.s32 1, %s1673_s26  ;;  %s2170_s6 = sld [smem:[#allocation17_spill]] }
  0x1b   : > { %s2169_s23 = scalar_select %p1835_p12, 1, 0 }
  0x1c   : > { %p1551_p3 = pneg %p1829_p11 }
  0x20   : > { %s1549_s24 = scalar_lea.hbm %s2170_s6, 16 }
  0x21   : > { %p1550_p0 = scmp.ne.s32.totalorder %s2170_s6, %s1549_s24  ;;  %p1556_p10 = scmp.lt.u32.totalorder %s1549_s24, %s2170_s6 }
  0x23   : > { %p1552_p5 = pnand %p1551_p3, %p1550_p0 }
  0x25   : > { %p1553_p7 = pneg %p1552_p5 }
  0x27   : > { %p1558_p9 = pnand %p1556_p10, %p1553_p7 }
  0x29   : > { %1561 = shalt.err (!%p1558_p9)
}
  0x2a   : > { %s1562_s22 = scalar_lea.vmem %s456_s1, 16  ;;  %s1569_s30 = scalar_lea.vmem %s456_s1, 32 }
  0x2b   : > { %p1563_p1 = scmp.ne.s32.totalorder %s456_s1, %s1562_s22  ;;  %p1570_p6 = scmp.lt.s32.totalorder %s456_s1, %s456_s1 }
  0x2c   : > { %p1571_p4 = scmp.lt.s32.totalorder %s1569_s30, %s1562_s22 }
  0x2d   : > { %p1565_p2 = pnand %p1563_p1, %p1551_p3 }
  0x2e   : > { %p1572_p8 = por %p1571_p4, %p1570_p6 }
  0x2f   : > { %p1566_p13 = pneg %p1565_p2 }
  0x31   : > { %p1573_p12 = pnand %p1572_p8, %p1566_p13 }
  0x33   : > { %1576 = shalt.err (!%p1573_p12)
}
  0x34   : > { %1475 = dma.hbm_to_vmem [thread:$0]  (!%p1829_p11), %s2170_s6, 16, %s456_s1, [#allocation6]  }
  0x35   : > { %p2171_p1 = scmp.ne.s32.totalorder %s2169_s23, 0  ;;  %p49_p2 = scmp.eq.s32.totalorder %s1677_s27, 0 }
  0x36   : > { %p2173_p4 = scmp.ne.s32.totalorder %s1673_s26, %s1669_s25  ;;  %p2174_p6 = scmp.eq.s32.totalorder %s1798_s28, 1 }
  0x37   : > { %s1861_s14 = scalar_select %p2171_p1, %s1673_s26, %s41_s29  }
  0x38   : > { %p1869_p8 = por %p2174_p6, %p2173_p4  ;;  %p1485_p9 = scmp.lt.s32.totalorder %s1677_s27, 2 }
  0x39   : > { %2172 = sst [smem:[#allocation14_spill]] %s1861_s14  ;;  %s496_s20 = sand.u32 1, %s1673_s26  }
  0x3a   : > { %p2176_p12 = pmov %p2173_p4  ;;  %s1304_s21 = sshll.u32 %s496_s20, 2 }
  0x3b   : > { %s1305_s19 = sshll.u32 %s1677_s27, 6  ;;  %s2177_s16 = sld [smem:[#allocation15_spill]] }
  0x3c   : > { %p50_p13 = por %p49_p2, %p2176_p12  ;;  %s500_s23 = scalar_lea.vmem [#allocation2], %s1304_s21 }
  0x3d   : > { %s507_s29 = sshll.u32 %s500_s23, 4  ;;  %s497_s6 = scalar_lea.sflag [#allocation3], %s496_s20  ;;  %s1888_s29 = int_to_ptr.vmem [resolvable:$true] %s507_s29 }
  0x3e   : > { %p1884_p11 = pnand %p1485_p9, %p50_p13 }
  0x40   : > { %p1579_p3 = pneg %p1884_p11 }
  0x41   : > { %s1882_s1 = scalar_lea.hbm %s2177_s16, %s1305_s19  ;;  %s1582_s22 = scalar_lea.hbm %s2177_s16, 128 }
  0x42   : > { %s1577_s14 = scalar_lea.hbm %s1882_s1, 64  ;;  %p1583_p10 = scmp.lt.u32.totalorder %s1882_s1, %s2177_s16 }
  0x43   : > { %p1578_p0 = scmp.ne.s32.totalorder %s1882_s1, %s1577_s14  ;;  %p1584_p1 = scmp.lt.u32.totalorder %s1582_s22, %s1577_s14 }
  0x44   : > { %p1586_p4 = scmp.lt.u32.totalorder %s1577_s14, %s1882_s1 }
  0x45   : > { %p1580_p5 = pnand %p1579_p3, %p1578_p0  ;;  %p1585_p2 = por %p1584_p1, %p1583_p10 }
  0x47   : > { %p1581_p7 = pneg %p1580_p5  ;;  %p1587_p6 = por %p1586_p4, %p1585_p2 }
  0x49   : > { %p1588_p9 = pnand %p1587_p6, %p1581_p7 }
  0x4b   : > { %1591 = shalt.err (!%p1588_p9)
}
  0x4c   : > { %s1592_s20 = scalar_lea.vmem %s1888_s29, 64  ;;  %s1680_s19 = smov [#allocation2]  }
  0x4d   : > { %p1593_p12 = scmp.ne.s32.totalorder %s1888_s29, %s1592_s20  ;;  %s1597_s21 = sshll.u32 %s1680_s19, 4  ;;  %s1598_s21 = int_to_ptr.vmem [resolvable:$false] %s1597_s21 }
  0x4e   : > { %s1599_s30 = scalar_lea.vmem %s1598_s21, 128  ;;  %p1600_p5 = scmp.lt.s32.totalorder %s1888_s29, %s1598_s21 }
  0x4f   : > { %p1595_p13 = pnand %p1593_p12, %p1579_p3  ;;  %p1601_p10 = scmp.lt.s32.totalorder %s1599_s30, %s1592_s20 }
  0x51   : > { %p1596_p0 = pneg %p1595_p13  ;;  %p1602_p1 = por %p1601_p10, %p1600_p5 }
  0x53   : > { %p1603_p2 = pnand %p1602_p1, %p1596_p0 }
  0x55   : > { %1606 = shalt.err (!%p1603_p2)
}
  0x56   : > { %1479 = dma.hbm_to_vmem [thread:$0]  (!%p1884_p11), %s1882_s1, 64, %s1888_s29, %s497_s6  }
  0x57   : > { %p2179_p7 = scmp.ne.s32.totalorder %s2166_s18, 0 }
  0x58   : > { %s1918_s14 = sand.u32 (!%p2179_p7), 1, %s1669_s25   ;;  %p2180_p3 = scmp.ne.s32.totalorder (!%p2179_p7), %s2163_s0, 0 }
  0x59   : > { %516 = sbr.rel (%p2179_p7) target bundleno = 1866 (0x74a), region = 88  ;;  %s1307_s22 = sshll.u32 (!%p2179_p7), %s1918_s14, 2 }
  0x5a   : > { %s519_s23 = scalar_lea.sflag (!%p2179_p7), [#allocation3], %s1918_s14  ;;  %s522_s20 = scalar_lea.vmem (!%p2179_p7), [#allocation2], %s1307_s22 }
  0x60   : > { %1652 = dma.done.wait (%p2180_p3), %s519_s23, 64  }
  0x61   : > { %1654 = vsyncadd (%p2180_p3), %s519_s23, 4294967232  ;;  %p2181_p4 = scmp.eq.s32.totalorder %s1798_s28, 0 }
  0x63   : > { %1656 = dma.done.wait (%p2181_p4), [#allocation6], 16   ;;  %p2182_p11 = pmov %p2181_p4 }
  0x64   : > { %v1681_v0 = vmov 0.0   ;;  %vm1682_vm0 = vmmov 0   ;;  %s2183_s18 = sld [smem:[#allocation16_spill]]  ;;  %v1528_v3 = vld [vmem:[%s2131_s3] sm:$0xff]   ;;  %vm602_vm1 = vcmask 261120   ;;  %v1529_v5 = vld [vmem:[%s2131_s3 + $0x8] sm:$0xff]  }
  0x65   : > { %1658 = vsyncadd (%p2182_p11), [#allocation6], 4294967280  ;;  %1386 = vmatprep.subr.bf16.mxu0 %v1681_v0  ;;  %1390 = vmatprep.mubr.msk.bf16.mxu0 %vm1682_vm0, %v1681_v0  ;;  %v578_v4 = vld [vmem:[%s522_s20] sm:$0xf]  ;;  %v1530_v6 = vld [vmem:[%s2131_s3 + $0x10] sm:$0xff]   ;;  %vm693_vm2 = vcmask 523264  }
  0x66   : > { %1394 = vmatprep.subr.bf16.mxu1 %v1681_v0  ;;  %1402 = vmatprep.mubr.msk.bf16.mxu1 %vm1682_vm0, %v1681_v0  ;;  %v1531_v7 = vld [vmem:[%s2131_s3 + $0x18] sm:$0xff]   ;;  %v1532_v8 = vld [vmem:[%s2133_s5] sm:$0xff]   ;;  %v1533_v9 = vld [vmem:[%s2133_s5 + $0x8] sm:$0xff]   ;;  %s1683_s30 = smov 32   ;;  %s1309_s0 = sshll.u32 %s1918_s14, 4  ;;  %vm651_vm3 = vcmask 785664  }
  0x67   : > { %1395 = vmatpush3.bf16.msra.mxu1 %v1528_v3  ;;  %v1310_v10 = vld [vmem:[%s2130_s2] ss:$0 sm:$0xff]  ;;  %v1534_v18 = vld [vmem:[%s2133_s5 + $0x10] sm:$0xff]   ;;  %v1535_v19 = vld [vmem:[%s2133_s5 + $0x18] sm:$0xff]   ;;  %s1987_s1 = scalar_lea.vmem [#allocation7], %s1309_s0  ;;  %s1684_s22 = smov 96  }
  0x68   : > { %1396 = vmatprep.subr.bf16.mxu1 %v1681_v0  ;;  %v1536_v21 = vld [vmem:[%s2135_s7] sm:$0xff]   ;;  %v1537_v30 = vld [vmem:[%s2135_s7 + $0x8] sm:$0xff]   ;;  %vm742_vm4 = vcmask 1048320   ;;  %vm833_vm5 = vcmask 523520   ;;  %vm924_vm6 = vcmask 130048   ;;  %vm906_vm7 = vcmask 654848  }
  0x69   : > { %v1314_v22 = vld [vmem:[%s2132_s4] ss:$0 sm:$0xff]  ;;  %v1320_v33 = vld [vmem:[#allocation5] ss:$0 sm:$0xff]  ;;  %v1543_v62 = vld [vmem:[%s2141_s13 + $0x10] sm:$0xff]   ;;  %s2184_s0 = sld [smem:[#allocation18_spill]] }
  0x6a   : > { %v1526_v1 = vld [vmem:[%s2183_s18] sm:$0xff]   ;;  %v1527_v2 = vld [vmem:[%s2183_s18 + $0x8] sm:$0xff]   ;;  %v1544_v63 = vld [vmem:[%s2141_s13 + $0x18] sm:$0xff]   ;;  %s2185_s19 = sld [smem:[#allocation19_spill]]  ;;  %s1354_s21 = sshll.u32 %s1798_s28, 8 }
  0x6b   : > { %1387 = vmatpush3.bf16.msra.mxu0 %v1526_v1  ;;  %1397 = vmatpush3.bf16.msra.mxu1 %v1529_v5  ;;  %v1538_v32 = vld [vmem:[%s2137_s9] sm:$0xff]   ;;  %v1540_v50 = vld [vmem:[%s2139_s11 + $0x8] sm:$0xff]   ;;  %s2186_s20 = sld [smem:[#allocation20_spill]]  ;;  %s1686_s29 = smov [#allocation7]  }
  0x6c   : > { %1388 = vmatprep.subr.bf16.mxu0 %v1681_v0  ;;  %1398 = vmatprep.subr.bf16.mxu1 %v1681_v0  ;;  %v1539_v42 = vld [vmem:[%s2139_s11] sm:$0xff]   ;;  %v1542_v52 = vld [vmem:[%s2141_s13 + $0x8] sm:$0xff]   ;;  %s1611_s17 = sshll.u32 %s1686_s29, 4  ;;  %s1612_s17 = int_to_ptr.vmem [resolvable:$false] %s1611_s17 }
  0x6d   : > { %v1326_v43 = vld [vmem:[%s2136_s8] ss:$0 sm:$0xff] }
  0x6e   : > { %v1541_v51 = vld [vmem:[%s2141_s13] sm:$0xff]  }
  0x6f   : > { %1389 = vmatpush3.bf16.msra.mxu0 %v1527_v2  ;;  %1399 = vmatpush3.bf16.msra.mxu1 %v1530_v6  ;;  %v1330_v54 = vld [vmem:[%s2138_s10] ss:$0 sm:$0xff]  ;;  %v1546_v2 = vld [vmem:[%s2143_s15 + $0x8] sm:$0xff]  }
  0x70   : > { %1406 = vmatprep.subr.bf16.mxu0 %v1681_v0  ;;  %1400 = vmatprep.subr.bf16.mxu1 %v1681_v0  ;;  %v1545_v1 = vld [vmem:[%s2143_s15] sm:$0xff]  }
  0x71   : > { %v1333_v3 = vld [vmem:[%s2140_s12] ss:$0 sm:$0xff]  ;;  %s2082_s6 = scalar_lea.hbm %s2186_s20, %s1354_s21 }
  0x72   : > { %1391 = vmatmul.mubr.msk.bf16.vlgmr.msra.gmra.mrb[0].mxu0 %vm602_vm1, %v578_v4 }
  0x73   : > { %1414 = vmatprep.mubr.msk.bf16.mxu0 %vm1682_vm0, %v1681_v0  ;;  %1401 = vmatpush3.bf16.msra.mxu1 %v1531_v7 }
  0x74   : > { %1418 = vmatprep.subr.bf16.mxu1 %v1681_v0  ;;  %1407 = vmatpush3.bf16.msra.mxu0 %v1532_v8 }
  0x75   : > { %1408 = vmatprep.subr.bf16.mxu0 %v1681_v0 }
  0x78   : > { %1409 = vmatpush3.bf16.msra.mxu0 %v1533_v9 }
  0x79   : > { %1410 = vmatprep.subr.bf16.mxu0 %v1681_v0 }
  0x7c   : > { %1411 = vmatpush3.bf16.msra.mxu0 %v1534_v18 }
  0x7d   : > { %1412 = vmatprep.subr.bf16.mxu0 %v1681_v0 }
  0x80   : > { %1413 = vmatpush3.bf16.msra.mxu0 %v1535_v19 }
  0x81   : > { %1426 = vmatprep.subr.bf16.mxu0 %v1681_v0 }
 0x145   : > { %v640_v11 = vpop.f32.mrb[0].mxu0 }
 0x146   : > { %v641_v12 = vadd.f32 %v1310_v10, %v640_v11  ;;  %v1392_v13 = vpop.f32.mrb[1].mxu0  ;;  %v1547_v11 = vld [vmem:[%s2143_s15 + $0x10] sm:$0xff]  }
 0x147   : > { %v643_v14 = vpop.f32.mrb[2].mxu0  ;;  %v1337_v13 = vld [vmem:[%s2184_s0] ss:$0 sm:$0xff]  ;;  %s1206_s0 = scalar_lea.sflag [#allocation4], %s1918_s14 }
 0x148   : > { %v646_v15 = vmax.f32 %v641_v12, 0.0  ;;  %v1393_v16 = vpop.f32.mrb[3].mxu0  ;;  %v1548_v12 = vld [vmem:[%s2143_s15 + $0x18] sm:$0xff]  }
 0x14a   : > { %v662_v17 = vpack.c.bf16 %v646_v15, %v646_v15  ;;  %648 = vrot.lane.b32.xlu0 %v646_v15, %s1683_s30 }
 0x14c   : > { %1403 = vmatmul.mubr.msk.bf16.vlgmr.msra.gmra.mrb[0].mxu1 %vm693_vm2, %v662_v17 }
 0x14d   : > { %1422 = vmatprep.mubr.msk.bf16.mxu1 %vm1682_vm0, %v1681_v0  ;;  %1419 = vmatpush3.bf16.msra.mxu1 %v1536_v21 }
 0x14e   : > { %1420 = vmatprep.subr.bf16.mxu1 %v1681_v0 }
 0x151   : > { %1421 = vmatpush3.bf16.msra.mxu1 %v1537_v30 }
 0x152   : > { %1432 = vmatprep.subr.bf16.mxu1 %v1681_v0 }
 0x1bc   : > { %v649_v20 = vpop.permute.xlu0 %648 }
 0x1bd   : > { %652 = vst.msk [vmem:[%s1987_s1] sm:$0xff] %vm651_vm3, %v649_v20 }
 0x21f   : > { %v731_v23 = vpop.f32.mrb[0].mxu1 }
 0x220   : > { %v732_v24 = vadd.f32 %v1314_v22, %v731_v23  ;;  %v1404_v25 = vpop.f32.mrb[1].mxu1 }
 0x221   : > { %v734_v26 = vpop.f32.mrb[2].mxu1 }
 0x222   : > { %v737_v27 = vmax.f32 %v732_v24, 0.0  ;;  %v1405_v28 = vpop.f32.mrb[3].mxu1 }
 0x224   : > { %v754_v29 = vpack.c.bf16 %v737_v27, %v737_v27  ;;  %739 = vrot.lane.b32.xlu0 %v737_v27, %s1684_s22 }
 0x226   : > { %1415 = vmatmul.mubr.msk.bf16.vlgmr.msra.gmra.mrb[4].mxu0 %vm693_vm2, %v754_v29 }
 0x227   : > { %1428 = vmatprep.mubr.msk.bf16.mxu0 %vm1682_vm0, %v1681_v0  ;;  %1427 = vmatpush3.bf16.msra.mxu0 %v1538_v32 }
 0x228   : > { %1440 = vmatprep.subr.bf16.mxu0 %v1681_v0 }
 0x296   : > { %v740_v31 = vpop.permute.xlu0 %739 }
 0x297   : > { %743 = vst.msk [vmem:[%s1987_s1] sm:$0xff] %vm742_vm4, %v740_v31 }
 0x298   : > { %744 = vst.msk [vmem:[%s1987_s1 + $0x8] sm:$0xff] %vm602_vm1, %v740_v31 }
 0x2f9   : > { %v822_v34 = vpop.f32.mrb[4].mxu0 }
 0x2fa   : > { %v823_v35 = vadd.f32 %v1320_v33, %v822_v34  ;;  %v1416_v36 = vpop.f32.mrb[5].mxu0 }
 0x2fb   : > { %v825_v37 = vpop.f32.mrb[6].mxu0 }
 0x2fc   : > { %v828_v38 = vmax.f32 %v823_v35, 0.0  ;;  %v1417_v39 = vpop.f32.mrb[7].mxu0 }
 0x2fe   : > { %v840_v40 = vpack.c.bf16 %v828_v38, %v828_v38  ;;  %830 = vrot.lane.b32.xlu1 %v828_v38, %s1683_s30  ;;  %s1685_s30 = smov 64  }
 0x300   : > { %1423 = vmatmul.mubr.msk.bf16.vlgmr.msra.gmra.mrb[4].mxu1 %vm602_vm1, %v840_v40 }
 0x301   : > { %1436 = vmatprep.mubr.msk.bf16.mxu1 %vm1682_vm0, %v1681_v0  ;;  %1433 = vmatpush3.bf16.msra.mxu1 %v1539_v42 }
 0x302   : > { %1434 = vmatprep.subr.bf16.mxu1 %v1681_v0 }
 0x305   : > { %1435 = vmatpush3.bf16.msra.mxu1 %v1540_v50 }
 0x306   : > { %1452 = vmatprep.subr.bf16.mxu1 %v1681_v0 }
 0x370   : > { %v831_v41 = vpop.permute.xlu1 %830 }
 0x371   : > { %834 = vst.msk [vmem:[%s1987_s1 + $0x8] sm:$0xff] %vm833_vm5, %v831_v41 }
 0x3d3   : > { %v896_v44 = vpop.f32.mrb[4].mxu1 }
 0x3d4   : > { %v897_v45 = vadd.f32 %v1326_v43, %v896_v44  ;;  %v1424_v46 = vpop.f32.mrb[5].mxu1 }
 0x3d5   : > { %v899_v47 = vpop.f32.mrb[6].mxu1 }
 0x3d6   : > { %v911_v48 = vpack.c.bf16 %v897_v45, %v897_v45  ;;  %903 = vrot.lane.b32.xlu1 %v897_v45, %s1685_s30  ;;  %v1425_v49 = vpop.f32.mrb[7].mxu1  ;;  %s1220_s30 = sshll.u32 %s1987_s1, 4  ;;  %s2084_s30 = int_to_ptr.vmem [resolvable:$true] %s1220_s30 }
 0x3d7   : > { %s1607_s28 = scalar_lea.vmem %s2084_s30, 256  ;;  %p1614_p13 = scmp.lt.s32.totalorder %s2084_s30, %s1612_s17 }
 0x3d8   : > { %1429 = vmatmul.mubr.msk.bf16.vlgmr.msra.gmra.mrb[8].mxu0 %vm924_vm6, %v911_v48  ;;  %p1608_p6 = scmp.ne.s32.totalorder %s2084_s30, %s1607_s28 }
 0x3d9   : > { %1448 = vmatprep.mubr.msk.bf16.mxu0 %vm1682_vm0, %v1681_v0  ;;  %1441 = vmatpush3.bf16.msra.mxu0 %v1541_v51 }
 0x3da   : > { %1442 = vmatprep.subr.bf16.mxu0 %v1681_v0  ;;  %p1609_p9 = pnand %p1608_p6, %p1869_p8 }
 0x3dc   : > { %p1610_p12 = pneg %p1609_p9 }
 0x3dd   : > { %1443 = vmatpush3.bf16.msra.mxu0 %v1542_v52 }
 0x3de   : > { %1444 = vmatprep.subr.bf16.mxu0 %v1681_v0 }
 0x3e1   : > { %1445 = vmatpush3.bf16.msra.mxu0 %v1543_v62 }
 0x3e2   : > { %1446 = vmatprep.subr.bf16.mxu0 %v1681_v0 }
 0x3e5   : > { %1447 = vmatpush3.bf16.msra.mxu0 %v1544_v63 }
 0x448   : > { %v904_v53 = vpop.permute.xlu1 %903 }
 0x449   : > { %907 = vst.msk [vmem:[%s1987_s1 + $0x8] sm:$0xff] %vm906_vm7, %v904_v53 }
 0x4ab   : > { %v962_v55 = vpop.f32.mrb[8].mxu0 }
 0x4ac   : > { %v963_v56 = vadd.f32 %v1330_v54, %v962_v55  ;;  %v1430_v57 = vpop.f32.mrb[9].mxu0 }
 0x4ad   : > { %v965_v58 = vpop.f32.mrb[10].mxu0 }
 0x4ae   : > { %v968_v59 = vmax.f32 %v963_v56, 0.0  ;;  %v1431_v60 = vpop.f32.mrb[11].mxu0 }
 0x4b0   : > { %v974_v61 = vpack.c.bf16 %v968_v59, %v968_v59 }
 0x4b2   : > { %1437 = vmatmul.mubr.msk.bf16.vlgmr.msra.gmra.mrb[8].mxu1 %vm602_vm1, %v974_v61 }
 0x4b3   : > { %1460 = vmatprep.mubr.msk.bf16.mxu1 %vm1682_vm0, %v1681_v0  ;;  %1453 = vmatpush3.bf16.msra.mxu1 %v1545_v1 }
 0x4b4   : > { %1454 = vmatprep.subr.bf16.mxu1 %v1681_v0 }
 0x4b7   : > { %1455 = vmatpush3.bf16.msra.mxu1 %v1546_v2 }
 0x4b8   : > { %1456 = vmatprep.subr.bf16.mxu1 %v1681_v0 }
 0x4bb   : > { %1457 = vmatpush3.bf16.msra.mxu1 %v1547_v11 }
 0x4bc   : > { %1458 = vmatprep.subr.bf16.mxu1 %v1681_v0  ;;  %v1343_v0 = vld [vmem:[%s2185_s19] ss:$0 sm:$0xff]  ;;  %s1613_s19 = scalar_lea.vmem %s1612_s17, 512 }
 0x4bd   : > { %p1615_p0 = scmp.lt.s32.totalorder %s1613_s19, %s1607_s28 }
 0x4bf   : > { %1459 = vmatpush3.bf16.msra.mxu1 %v1548_v12  ;;  %p1616_p5 = por %p1615_p0, %p1614_p13 }
 0x4c1   : > { %p1617_p10 = pnand %p1616_p5, %p1610_p12 }
 0x585   : > { %v1030_v4 = vpop.f32.mrb[8].mxu1 }
 0x586   : > { %v1031_v5 = vadd.f32 %v1333_v3, %v1030_v4  ;;  %v1438_v6 = vpop.f32.mrb[9].mxu1 }
 0x587   : > { %v1033_v7 = vpop.f32.mrb[10].mxu1 }
 0x588   : > { %v1036_v8 = vmax.f32 %v1031_v5, 0.0  ;;  %v1439_v9 = vpop.f32.mrb[11].mxu1 }
 0x58a   : > { %v1046_v10 = vpack.c.bf16 %v1036_v8, %v1036_v8 }
 0x58c   : > { %1449 = vmatmul.mubr.msk.bf16.vlgmr.msra.gmra.mrb[12].mxu0 %vm693_vm2, %v1046_v10 }
 0x65f   : > { %v1114_v14 = vpop.f32.mrb[12].mxu0 }
 0x660   : > { %v1115_v15 = vadd.f32 %v1337_v13, %v1114_v14  ;;  %v1450_v16 = vpop.f32.mrb[13].mxu0 }
 0x661   : > { %v1117_v17 = vpop.f32.mrb[14].mxu0 }
 0x662   : > { %v1120_v18 = vmax.f32 %v1115_v15, 0.0  ;;  %v1451_v19 = vpop.f32.mrb[15].mxu0 }
 0x664   : > { %v1130_v20 = vpack.c.bf16 %v1120_v18, %v1120_v18 }
 0x666   : > { %1461 = vmatmul.mubr.msk.bf16.vlgmr.msra.gmra.mrb[12].mxu1 %vm693_vm2, %v1130_v20 }
 0x739   : > { %v1198_v21 = vpop.f32.mrb[12].mxu1 }
 0x73a   : > { %v1199_v22 = vadd.f32 %v1343_v0, %v1198_v21  ;;  %v1462_v23 = vpop.f32.mrb[13].mxu1 }
 0x73b   : > { %v1201_v24 = vpop.f32.mrb[14].mxu1 }
 0x73c   : > { %1204 = vst.msk [vmem:[%s1987_s1] sm:$0xff] %vm602_vm1, %v1199_v22  ;;  %v1463_v25 = vpop.f32.mrb[15].mxu1 }
 0x73d   : > { %1620 = shalt.err (!%p1617_p10)
}
 0x73e   : > { %s1621_s14 = scalar_lea.hbm %s2082_s6, 256  ;;  %s1625_s22 = scalar_lea.hbm %s2186_s20, 512 }
 0x73f   : > { %p1622_p1 = scmp.ne.s32.totalorder %s2082_s6, %s1621_s14  ;;  %p1626_p3 = scmp.lt.u32.totalorder %s2082_s6, %s2186_s20 }
 0x740   : > { %p1627_p4 = scmp.lt.u32.totalorder %s1625_s22, %s1621_s14  ;;  %p1629_p6 = scmp.lt.u32.totalorder %s1621_s14, %s2082_s6 }
 0x741   : > { %p1623_p2 = pnand %p1622_p1, %p1869_p8 }
 0x742   : > { %p1628_p11 = por %p1627_p4, %p1626_p3 }
 0x743   : > { %p1624_p7 = pneg %p1623_p2 }
 0x744   : > { %p1630_p9 = por %p1629_p6, %p1628_p11 }
 0x746   : > { %p1631_p12 = pnand %p1630_p9, %p1624_p7 }
 0x748   : > { %1634 = shalt.err (!%p1631_p12)
}
 0x749   : > { %1470 = dma.vmem_to_hbm [thread:$0]  (%p1869_p8), %s2084_s30, 256, %s2082_s6, %s1206_s0  }
 0x74a PF: > { %s2187_s28 = sld [smem:[#allocation11_spill]]  ;;  %s2188_s17 = sld [smem:[#allocation12_spill]] }
 0x74b   : > { %p2190_p0 = scmp.ge.s32.totalorder %s1677_s27, 2 }
 0x750   : > { %s1232_s19 = sand.u32 1, %s2187_s28   ;;  %p2189_p13 = scmp.ne.s32.totalorder %s2188_s17, 0 }
 0x751   : > { %s1233_s1 = scalar_lea.sflag [#allocation4], %s1232_s19 }
 0x752   : > { %p1481_p5 = pnand %p2190_p0, %p2189_p13 }
 0x754   : > { %1660 = dma.done.wait (!%p1481_p5), %s1233_s1, 256  }
 0x755   : > { %1662 = vsyncadd (!%p1481_p5), %s1233_s1, 4294967040  ;;  %s2191_s27 = sld [smem:[#allocation13_spill]]  ;;  %s2192_s14 = sld [smem:[#allocation14_spill]] }
 0x756   : > { %s2193_s24 = smov %s1669_s25  ;;  %s2194_s25 = smov %s1673_s26 }
 0x75b   : > { %p31_p10 = scmp.ge.s32.totalorder %s2191_s27, 4   ;;  %s2195_s26 = smov %s2192_s14 }
 0x75d   :  { %33 = sbr.rel (!%p31_p10) target bundleno = 13 (0xd), region = 137 }
 0x764   :  { %1238 = vsyncpa [#allocation3], 1 }
 0x765   :  { %1240 = vsyncpa [#allocation3 + $0x1], 1 }
 0x766   :  { %1241 = vsyncpa [#allocation6], 1 }
 0x767   :  { %1242 = vsyncpa [#allocation4], 1 }
 0x768   :  { %1244 = vsyncpa [#allocation4 + $0x1], 1 }

// kernel: tpu_custom_call.1
= control target key start
LH: loop header
LB: loop body
LE: loop exit
PB: predicated region body
PF: predicated region fallthrough
CT: control target
= control target key end

     0   :  { %s2128_s0 = inlined_call_operand.hbm [shape: bf16[16,32], index: 0, kind: input, shape index: {}]   ;;  %s2129_s1 = inlined_call_operand.vmem [shape: bf16[32,64], index: 1, kind: input, shape index: {}]   ;;  %s2130_s2 = inlined_call_operand.vmem [shape: f32[1,64], index: 2, kind: input, shape index: {}]   ;;  %s2131_s3 = inlined_call_operand.vmem [shape: bf16[64,64], index: 3, kind: input, shape index: {}]   ;;  %s2132_s4 = inlined_call_operand.vmem [shape: f32[1,64], index: 4, kind: input, shape index: {}]   ;;  %s2133_s5 = inlined_call_operand.vmem [shape: bf16[64,32], index: 5, kind: input, shape index: {}]   ;;  %s2134_s6 = inlined_call_operand.hbm [shape: f32[1,32], index: 6, kind: input, shape index: {}]   ;;  %s2135_s7 = inlined_call_operand.vmem [shape: bf16[32,16], index: 7, kind: input, shape index: {}]   ;;  %s2136_s8 = inlined_call_operand.vmem [shape: f32[1,16], index: 8, kind: input, shape index: {}]   ;;  %s2137_s9 = inlined_call_operand.vmem [shape: bf16[16,32], index: 9, kind: input, shape index: {}]   ;;  %s2138_s10 = inlined_call_operand.vmem [shape: f32[1,32], index: 10, kind: input, shape index: {}]   ;;  %s2139_s11 = inlined_call_operand.vmem [shape: bf16[32,64], index: 11, kind: input, shape index: {}]   ;;  %s2140_s12 = inlined_call_operand.vmem [shape: f32[1,64], index: 12, kind: input, shape index: {}]   ;;  %s2141_s13 = inlined_call_operand.vmem [shape: bf16[64,64], index: 13, kind: input, shape index: {}]   ;;  %s2142_s14 = inlined_call_operand.vmem [shape: f32[1,64], index: 14, kind: input, shape index: {}]   ;;  %s2143_s15 = inlined_call_operand.vmem [shape: bf16[64,32], index: 15, kind: input, shape index: {}]   ;;  %s2144_s16 = inlined_call_operand.vmem [shape: f32[1,32], index: 16, kind: input, shape index: {}]   ;;  %s2145_s17 = inlined_call_operand.hbm [shape: f32[16,208], index: 17, kind: output, shape index: {}]  }
   0x1   :  { %2156 = sst [smem:[#allocation15_spill]] %s2128_s0 }
   0x2   :  { %2157 = sst [smem:[#allocation16_spill]] %s2129_s1 }
   0x3   :  { %2158 = sst [smem:[#allocation17_spill]] %s2134_s6 }
   0x4   :  { %2159 = sst [smem:[#allocation18_spill]] %s2142_s14 }
   0x5   :  { %2160 = sst [smem:[#allocation19_spill]] %s2144_s16 }
   0x6   :  { %2161 = sst [smem:[#allocation20_spill]] %s2145_s17 }
   0x7   :  { %22 = vsyncpa [#allocation3], 0 }
   0x8   :  { %24 = vsyncpa [#allocation3 + $0x1], 0 }
   0x9   :  { %25 = vsyncpa [#allocation6], 0 }
   0xa   :  { %26 = vsyncpa [#allocation4], 0 }
   0xb   :  { %28 = vsyncpa [#allocation4 + $0x1], 0  ;;  %s1777_s24 = smov 0   ;;  %s1779_s25 = smov 0  }
   0xc   :  { %s1781_s26 = smov 0   ;;  %s1783_s27 = smov 0  }
   0xd LB: > { %2162 = sst [smem:[#allocation11_spill]] %s1665_s24  ;;  %s1798_s28 = sadd.s32 4294967295, %s1677_s27   ;;  %s1677_s27 = sphi %s1783_s27, %s2191_s27   ;;  %s1673_s26 = sphi %s1781_s26, %s2195_s26   ;;  %s1669_s25 = sphi %s1779_s25, %s2194_s25   ;;  %s1665_s24 = sphi %s1777_s24, %s2193_s24  }
   0xe   : > { %s1300_s29 = sadd.s32 4294967294, %s1677_s27   ;;  %p54_p0 = scmp.ne.s32.totalorder %s1669_s25, %s1665_s24 }
   0xf   : > { %p2153_p1 = scmp.eq.s32.totalorder %s1798_s28, 0  ;;  %p420_p3 = scmp.eq.s32.totalorder %s1300_s29, 1 }
  0x10   : > { %p1301_p5 = scmp.ge.s32.totalorder %s1677_s27, 1  ;;  %p427_p7 = scmp.lt.s32.totalorder %s1677_s27, 3 }
  0x11   : > { %p1807_p4 = por %p2153_p1, %p54_p0  ;;  %p1812_p6 = por %p420_p3, %p54_p0 }
  0x12   : > { %p1817_p8 = pnand %p1301_p5, %p427_p7  ;;  %s1679_s19 = smov [#allocation5]  }
  0x13   : > { %s2163_s0 = scalar_select %p1807_p4, 1, 0 }
  0x14   : > { %s2164_s30 = scalar_select %p1812_p6, 1, 0 }
  0x15   : > { %s2166_s18 = scalar_select %p1817_p8, 1, 0 }
  0x16   : > { %2165 = sst [smem:[#allocation12_spill]] %s2164_s30  ;;  %s455_s1 = sshll.u32 %s1679_s19, 4  ;;  %s456_s1 = int_to_ptr.vmem [resolvable:$true] %s455_s1 }
  0x17   : > { %p1472_p10 = pneg %p1817_p8  ;;  %s1825_s20 = sadd.s32 1, %s1677_s27  }
  0x18   : > { %2167 = sst [smem:[#allocation13_spill]] %s1825_s20  ;;  %s38_s22 = ssub.s32 %s1677_s27, %s1825_s20 }
  0x19   : > { %p1829_p11 = pnand %p1472_p10, %p2153_p1  ;;  %p1835_p12 = scmp.eq.s32.totalorder %s38_s22, 0 }
  0x1a   : > { %s41_s29 = sadd.s32 1, %s1673_s26  ;;  %s2170_s6 = sld [smem:[#allocation17_spill]] }
  0x1b   : > { %s2169_s23 = scalar_select %p1835_p12, 1, 0 }
  0x1c   : > { %p1551_p3 = pneg %p1829_p11 }
  0x20   : > { %s1549_s24 = scalar_lea.hbm %s2170_s6, 16 }
  0x21   : > { %p1550_p0 = scmp.ne.s32.totalorder %s2170_s6, %s1549_s24  ;;  %p1556_p10 = scmp.lt.u32.totalorder %s1549_s24, %s2170_s6 }
  0x23   : > { %p1552_p5 = pnand %p1551_p3, %p1550_p0 }
  0x25   : > { %p1553_p7 = pneg %p1552_p5 }
  0x27   : > { %p1558_p9 = pnand %p1556_p10, %p1553_p7 }
  0x29   : > { %1561 = shalt.err (!%p1558_p9)
}
  0x2a   : > { %s1562_s22 = scalar_lea.vmem %s456_s1, 16  ;;  %s1569_s30 = scalar_lea.vmem %s456_s1, 32 }
  0x2b   : > { %p1563_p1 = scmp.ne.s32.totalorder %s456_s1, %s1562_s22  ;;  %p1570_p6 = scmp.lt.s32.totalorder %s456_s1, %s456_s1 }
  0x2c   : > { %p1571_p4 = scmp.lt.s32.totalorder %s1569_s30, %s1562_s22 }
  0x2d   : > { %p1565_p2 = pnand %p1563_p1, %p1551_p3 }
  0x2e   : > { %p1572_p8 = por %p1571_p4, %p1570_p6 }
  0x2f   : > { %p1566_p13 = pneg %p1565_p2 }
  0x31   : > { %p1573_p12 = pnand %p1572_p8, %p1566_p13 }
  0x33   : > { %1576 = shalt.err (!%p1573_p12)
}
  0x34   : > { %1475 = dma.hbm_to_vmem [thread:$0]  (!%p1829_p11), %s2170_s6, 16, %s456_s1, [#allocation6]  }
  0x35   : > { %p2171_p1 = scmp.ne.s32.totalorder %s2169_s23, 0  ;;  %p49_p2 = scmp.eq.s32.totalorder %s1677_s27, 0 }
  0x36   : > { %p2173_p4 = scmp.ne.s32.totalorder %s1673_s26, %s1669_s25  ;;  %p2174_p6 = scmp.eq.s32.totalorder %s1798_s28, 1 }
  0x37   : > { %s1861_s14 = scalar_select %p2171_p1, %s1673_s26, %s41_s29  }
  0x38   : > { %p1869_p8 = por %p2174_p6, %p2173_p4  ;;  %p1485_p9 = scmp.lt.s32.totalorder %s1677_s27, 2 }
  0x39   : > { %2172 = sst [smem:[#allocation14_spill]] %s1861_s14  ;;  %s496_s20 = sand.u32 1, %s1673_s26  }
  0x3a   : > { %p2176_p12 = pmov %p2173_p4  ;;  %s1304_s21 = sshll.u32 %s496_s20, 2 }
  0x3b   : > { %s1305_s19 = sshll.u32 %s1677_s27, 6  ;;  %s2177_s16 = sld [smem:[#allocation15_spill]] }
  0x3c   : > { %p50_p13 = por %p49_p2, %p2176_p12  ;;  %s500_s23 = scalar_lea.vmem [#allocation2], %s1304_s21 }
  0x3d   : > { %s507_s29 = sshll.u32 %s500_s23, 4  ;;  %s497_s6 = scalar_lea.sflag [#allocation3], %s496_s20  ;;  %s1888_s29 = int_to_ptr.vmem [resolvable:$true] %s507_s29 }
  0x3e   : > { %p1884_p11 = pnand %p1485_p9, %p50_p13 }
  0x40   : > { %p1579_p3 = pneg %p1884_p11 }
  0x41   : > { %s1882_s1 = scalar_lea.hbm %s2177_s16, %s1305_s19  ;;  %s1582_s22 = scalar_lea.hbm %s2177_s16, 128 }
  0x42   : > { %s1577_s14 = scalar_lea.hbm %s1882_s1, 64  ;;  %p1583_p10 = scmp.lt.u32.totalorder %s1882_s1, %s2177_s16 }
  0x43   : > { %p1578_p0 = scmp.ne.s32.totalorder %s1882_s1, %s1577_s14  ;;  %p1584_p1 = scmp.lt.u32.totalorder %s1582_s22, %s1577_s14 }
  0x44   : > { %p1586_p4 = scmp.lt.u32.totalorder %s1577_s14, %s1882_s1 }
  0x45   : > { %p1580_p5 = pnand %p1579_p3, %p1578_p0  ;;  %p1585_p2 = por %p1584_p1, %p1583_p10 }
  0x47   : > { %p1581_p7 = pneg %p1580_p5  ;;  %p1587_p6 = por %p1586_p4, %p1585_p2 }
  0x49   : > { %p1588_p9 = pnand %p1587_p6, %p1581_p7 }
  0x4b   : > { %1591 = shalt.err (!%p1588_p9)
}
  0x4c   : > { %s1592_s20 = scalar_lea.vmem %s1888_s29, 64  ;;  %s1680_s19 = smov [#allocation2]  }
  0x4d   : > { %p1593_p12 = scmp.ne.s32.totalorder %s1888_s29, %s1592_s20  ;;  %s1597_s21 = sshll.u32 %s1680_s19, 4  ;;  %s1598_s21 = int_to_ptr.vmem [resolvable:$false] %s1597_s21 }
  0x4e   : > { %s1599_s30 = scalar_lea.vmem %s1598_s21, 128  ;;  %p1600_p5 = scmp.lt.s32.totalorder %s1888_s29, %s1598_s21 }
  0x4f   : > { %p1595_p13 = pnand %p1593_p12, %p1579_p3  ;;  %p1601_p10 = scmp.lt.s32.totalorder %s1599_s30, %s1592_s20 }
  0x51   : > { %p1596_p0 = pneg %p1595_p13  ;;  %p1602_p1 = por %p1601_p10, %p1600_p5 }
  0x53   : > { %p1603_p2 = pnand %p1602_p1, %p1596_p0 }
  0x55   : > { %1606 = shalt.err (!%p1603_p2)
}
  0x56   : > { %1479 = dma.hbm_to_vmem [thread:$0]  (!%p1884_p11), %s1882_s1, 64, %s1888_s29, %s497_s6  }
  0x57   : > { %p2179_p7 = scmp.ne.s32.totalorder %s2166_s18, 0 }
  0x58   : > { %s1918_s14 = sand.u32 (!%p2179_p7), 1, %s1669_s25   ;;  %p2180_p3 = scmp.ne.s32.totalorder (!%p2179_p7), %s2163_s0, 0 }
  0x59   : > { %516 = sbr.rel (%p2179_p7) target bundleno = 1866 (0x74a), region = 88  ;;  %s1307_s22 = sshll.u32 (!%p2179_p7), %s1918_s14, 2 }
  0x5a   : > { %s519_s23 = scalar_lea.sflag (!%p2179_p7), [#allocation3], %s1918_s14  ;;  %s522_s20 = scalar_lea.vmem (!%p2179_p7), [#allocation2], %s1307_s22 }
  0x60   : > { %1652 = dma.done.wait (%p2180_p3), %s519_s23, 64  }
  0x61   : > { %1654 = vsyncadd (%p2180_p3), %s519_s23, 4294967232  ;;  %p2181_p4 = scmp.eq.s32.totalorder %s1798_s28, 0 }
  0x63   : > { %1656 = dma.done.wait (%p2181_p4), [#allocation6], 16   ;;  %p2182_p11 = pmov %p2181_p4 }
  0x64   : > { %v1681_v0 = vmov 0.0   ;;  %vm1682_vm0 = vmmov 0   ;;  %s2183_s18 = sld [smem:[#allocation16_spill]]  ;;  %v1528_v3 = vld [vmem:[%s2131_s3] sm:$0xff]   ;;  %vm602_vm1 = vcmask 261120   ;;  %v1529_v5 = vld [vmem:[%s2131_s3 + $0x8] sm:$0xff]  }
  0x65   : > { %1658 = vsyncadd (%p2182_p11), [#allocation6], 4294967280  ;;  %1386 = vmatprep.subr.bf16.mxu0 %v1681_v0  ;;  %1390 = vmatprep.mubr.msk.bf16.mxu0 %vm1682_vm0, %v1681_v0  ;;  %v578_v4 = vld [vmem:[%s522_s20] sm:$0xf]  ;;  %v1530_v6 = vld [vmem:[%s2131_s3 + $0x10] sm:$0xff]   ;;  %vm693_vm2 = vcmask 523264  }
  0x66   : > { %1394 = vmatprep.subr.bf16.mxu1 %v1681_v0  ;;  %1402 = vmatprep.mubr.msk.bf16.mxu1 %vm1682_vm0, %v1681_v0  ;;  %v1531_v7 = vld [vmem:[%s2131_s3 + $0x18] sm:$0xff]   ;;  %v1532_v8 = vld [vmem:[%s2133_s5] sm:$0xff]   ;;  %v1533_v9 = vld [vmem:[%s2133_s5 + $0x8] sm:$0xff]   ;;  %s1683_s30 = smov 32   ;;  %s1309_s0 = sshll.u32 %s1918_s14, 4  ;;  %vm651_vm3 = vcmask 785664  }
  0x67   : > { %1395 = vmatpush3.bf16.msra.mxu1 %v1528_v3  ;;  %v1310_v10 = vld [vmem:[%s2130_s2] ss:$0 sm:$0xff]  ;;  %v1534_v18 = vld [vmem:[%s2133_s5 + $0x10] sm:$0xff]   ;;  %v1535_v19 = vld [vmem:[%s2133_s5 + $0x18] sm:$0xff]   ;;  %s1987_s1 = scalar_lea.vmem [#allocation7], %s1309_s0  ;;  %s1684_s22 = smov 96  }
  0x68   : > { %1396 = vmatprep.subr.bf16.mxu1 %v1681_v0  ;;  %v1536_v21 = vld [vmem:[%s2135_s7] sm:$0xff]   ;;  %v1537_v30 = vld [vmem:[%s2135_s7 + $0x8] sm:$0xff]   ;;  %vm742_vm4 = vcmask 1048320   ;;  %vm833_vm5 = vcmask 523520   ;;  %vm924_vm6 = vcmask 130048   ;;  %vm906_vm7 = vcmask 654848  }
  0x69   : > { %v1314_v22 = vld [vmem:[%s2132_s4] ss:$0 sm:$0xff]  ;;  %v1320_v33 = vld [vmem:[#allocation5] ss:$0 sm:$0xff]  ;;  %v1543_v62 = vld [vmem:[%s2141_s13 + $0x10] sm:$0xff]   ;;  %s2184_s0 = sld [smem:[#allocation18_spill]] }
  0x6a   : > { %v1526_v1 = vld [vmem:[%s2183_s18] sm:$0xff]   ;;  %v1527_v2 = vld [vmem:[%s2183_s18 + $0x8] sm:$0xff]   ;;  %v1544_v63 = vld [vmem:[%s2141_s13 + $0x18] sm:$0xff]   ;;  %s2185_s19 = sld [smem:[#allocation19_spill]]  ;;  %s1354_s21 = sshll.u32 %s1798_s28, 8 }
  0x6b   : > { %1387 = vmatpush3.bf16.msra.mxu0 %v1526_v1  ;;  %1397 = vmatpush3.bf16.msra.mxu1 %v1529_v5  ;;  %v1538_v32 = vld [vmem:[%s2137_s9] sm:$0xff]   ;;  %v1540_v50 = vld [vmem:[%s2139_s11 + $0x8] sm:$0xff]   ;;  %s2186_s20 = sld [smem:[#allocation20_spill]]  ;;  %s1686_s29 = smov [#allocation7]  }
  0x6c   : > { %1388 = vmatprep.subr.bf16.mxu0 %v1681_v0  ;;  %1398 = vmatprep.subr.bf16.mxu1 %v1681_v0  ;;  %v1539_v42 = vld [vmem:[%s2139_s11] sm:$0xff]   ;;  %v1542_v52 = vld [vmem:[%s2141_s13 + $0x8] sm:$0xff]   ;;  %s1611_s17 = sshll.u32 %s1686_s29, 4  ;;  %s1612_s17 = int_to_ptr.vmem [resolvable:$false] %s1611_s17 }
  0x6d   : > { %v1326_v43 = vld [vmem:[%s2136_s8] ss:$0 sm:$0xff] }
  0x6e   : > { %v1541_v51 = vld [vmem:[%s2141_s13] sm:$0xff]  }
  0x6f   : > { %1389 = vmatpush3.bf16.msra.mxu0 %v1527_v2  ;;  %1399 = vmatpush3.bf16.msra.mxu1 %v1530_v6  ;;  %v1330_v54 = vld [vmem:[%s2138_s10] ss:$0 sm:$0xff]  ;;  %v1546_v2 = vld [vmem:[%s2143_s15 + $0x8] sm:$0xff]  }
  0x70   : > { %1406 = vmatprep.subr.bf16.mxu0 %v1681_v0  ;;  %1400 = vmatprep.subr.bf16.mxu1 %v1681_v0  ;;  %v1545_v1 = vld [vmem:[%s2143_s15] sm:$0xff]  }
  0x71   : > { %v1333_v3 = vld [vmem:[%s2140_s12] ss:$0 sm:$0xff]  ;;  %s2082_s6 = scalar_lea.hbm %s2186_s20, %s1354_s21 }
  0x72   : > { %1391 = vmatmul.mubr.msk.bf16.vlgmr.msra.gmra.mrb[0].mxu0 %vm602_vm1, %v578_v4 }
  0x73   : > { %1414 = vmatprep.mubr.msk.bf16.mxu0 %vm1682_vm0, %v1681_v0  ;;  %1401 = vmatpush3.bf16.msra.mxu1 %v1531_v7 }
  0x74   : > { %1418 = vmatprep.subr.bf16.mxu1 %v1681_v0  ;;  %1407 = vmatpush3.bf16.msra.mxu0 %v1532_v8 }
  0x75   : > { %1408 = vmatprep.subr.bf16.mxu0 %v1681_v0 }
  0x78   : > { %1409 = vmatpush3.bf16.msra.mxu0 %v1533_v9 }
  0x79   : > { %1410 = vmatprep.subr.bf16.mxu0 %v1681_v0 }
  0x7c   : > { %1411 = vmatpush3.bf16.msra.mxu0 %v1534_v18 }
  0x7d   : > { %1412 = vmatprep.subr.bf16.mxu0 %v1681_v0 }
  0x80   : > { %1413 = vmatpush3.bf16.msra.mxu0 %v1535_v19 }
  0x81   : > { %1426 = vmatprep.subr.bf16.mxu0 %v1681_v0 }
 0x145   : > { %v640_v11 = vpop.f32.mrb[0].mxu0 }
 0x146   : > { %v641_v12 = vadd.f32 %v1310_v10, %v640_v11  ;;  %v1392_v13 = vpop.f32.mrb[1].mxu0  ;;  %v1547_v11 = vld [vmem:[%s2143_s15 + $0x10] sm:$0xff]  }
 0x147   : > { %v643_v14 = vpop.f32.mrb[2].mxu0  ;;  %v1337_v13 = vld [vmem:[%s2184_s0] ss:$0 sm:$0xff]  ;;  %s1206_s0 = scalar_lea.sflag [#allocation4], %s1918_s14 }
 0x148   : > { %v646_v15 = vmax.f32 %v641_v12, 0.0  ;;  %v1393_v16 = vpop.f32.mrb[3].mxu0  ;;  %v1548_v12 = vld [vmem:[%s2143_s15 + $0x18] sm:$0xff]  }
 0x14a   : > { %v662_v17 = vpack.c.bf16 %v646_v15, %v646_v15  ;;  %648 = vrot.lane.b32.xlu0 %v646_v15, %s1683_s30 }
 0x14c   : > { %1403 = vmatmul.mubr.msk.bf16.vlgmr.msra.gmra.mrb[0].mxu1 %vm693_vm2, %v662_v17 }
 0x14d   : > { %1422 = vmatprep.mubr.msk.bf16.mxu1 %vm1682_vm0, %v1681_v0  ;;  %1419 = vmatpush3.bf16.msra.mxu1 %v1536_v21 }
 0x14e   : > { %1420 = vmatprep.subr.bf16.mxu1 %v1681_v0 }
 0x151   : > { %1421 = vmatpush3.bf16.msra.mxu1 %v1537_v30 }
 0x152   : > { %1432 = vmatprep.subr.bf16.mxu1 %v1681_v0 }
 0x1bc   : > { %v649_v20 = vpop.permute.xlu0 %648 }
 0x1bd   : > { %652 = vst.msk [vmem:[%s1987_s1] sm:$0xff] %vm651_vm3, %v649_v20 }
 0x21f   : > { %v731_v23 = vpop.f32.mrb[0].mxu1 }
 0x220   : > { %v732_v24 = vadd.f32 %v1314_v22, %v731_v23  ;;  %v1404_v25 = vpop.f32.mrb[1].mxu1 }
 0x221   : > { %v734_v26 = vpop.f32.mrb[2].mxu1 }
 0x222   : > { %v737_v27 = vmax.f32 %v732_v24, 0.0  ;;  %v1405_v28 = vpop.f32.mrb[3].mxu1 }
 0x224   : > { %v754_v29 = vpack.c.bf16 %v737_v27, %v737_v27  ;;  %739 = vrot.lane.b32.xlu0 %v737_v27, %s1684_s22 }
 0x226   : > { %1415 = vmatmul.mubr.msk.bf16.vlgmr.msra.gmra.mrb[4].mxu0 %vm693_vm2, %v754_v29 }
 0x227   : > { %1428 = vmatprep.mubr.msk.bf16.mxu0 %vm1682_vm0, %v1681_v0  ;;  %1427 = vmatpush3.bf16.msra.mxu0 %v1538_v32 }
 0x228   : > { %1440 = vmatprep.subr.bf16.mxu0 %v1681_v0 }
 0x296   : > { %v740_v31 = vpop.permute.xlu0 %739 }
 0x297   : > { %743 = vst.msk [vmem:[%s1987_s1] sm:$0xff] %vm742_vm4, %v740_v31 }
 0x298   : > { %744 = vst.msk [vmem:[%s1987_s1 + $0x8] sm:$0xff] %vm602_vm1, %v740_v31 }
 0x2f9   : > { %v822_v34 = vpop.f32.mrb[4].mxu0 }
 0x2fa   : > { %v823_v35 = vadd.f32 %v1320_v33, %v822_v34  ;;  %v1416_v36 = vpop.f32.mrb[5].mxu0 }
 0x2fb   : > { %v825_v37 = vpop.f32.mrb[6].mxu0 }
 0x2fc   : > { %v828_v38 = vmax.f32 %v823_v35, 0.0  ;;  %v1417_v39 = vpop.f32.mrb[7].mxu0 }
 0x2fe   : > { %v840_v40 = vpack.c.bf16 %v828_v38, %v828_v38  ;;  %830 = vrot.lane.b32.xlu1 %v828_v38, %s1683_s30  ;;  %s1685_s30 = smov 64  }
 0x300   : > { %1423 = vmatmul.mubr.msk.bf16.vlgmr.msra.gmra.mrb[4].mxu1 %vm602_vm1, %v840_v40 }
 0x301   : > { %1436 = vmatprep.mubr.msk.bf16.mxu1 %vm1682_vm0, %v1681_v0  ;;  %1433 = vmatpush3.bf16.msra.mxu1 %v1539_v42 }
 0x302   : > { %1434 = vmatprep.subr.bf16.mxu1 %v1681_v0 }
 0x305   : > { %1435 = vmatpush3.bf16.msra.mxu1 %v1540_v50 }
 0x306   : > { %1452 = vmatprep.subr.bf16.mxu1 %v1681_v0 }
 0x370   : > { %v831_v41 = vpop.permute.xlu1 %830 }
 0x371   : > { %834 = vst.msk [vmem:[%s1987_s1 + $0x8] sm:$0xff] %vm833_vm5, %v831_v41 }
 0x3d3   : > { %v896_v44 = vpop.f32.mrb[4].mxu1 }
 0x3d4   : > { %v897_v45 = vadd.f32 %v1326_v43, %v896_v44  ;;  %v1424_v46 = vpop.f32.mrb[5].mxu1 }
 0x3d5   : > { %v899_v47 = vpop.f32.mrb[6].mxu1 }
 0x3d6   : > { %v911_v48 = vpack.c.bf16 %v897_v45, %v897_v45  ;;  %903 = vrot.lane.b32.xlu1 %v897_v45, %s1685_s30  ;;  %v1425_v49 = vpop.f32.mrb[7].mxu1  ;;  %s1220_s30 = sshll.u32 %s1987_s1, 4  ;;  %s2084_s30 = int_to_ptr.vmem [resolvable:$true] %s1220_s30 }
 0x3d7   : > { %s1607_s28 = scalar_lea.vmem %s2084_s30, 256  ;;  %p1614_p13 = scmp.lt.s32.totalorder %s2084_s30, %s1612_s17 }
 0x3d8   : > { %1429 = vmatmul.mubr.msk.bf16.vlgmr.msra.gmra.mrb[8].mxu0 %vm924_vm6, %v911_v48  ;;  %p1608_p6 = scmp.ne.s32.totalorder %s2084_s30, %s1607_s28 }
 0x3d9   : > { %1448 = vmatprep.mubr.msk.bf16.mxu0 %vm1682_vm0, %v1681_v0  ;;  %1441 = vmatpush3.bf16.msra.mxu0 %v1541_v51 }
 0x3da   : > { %1442 = vmatprep.subr.bf16.mxu0 %v1681_v0  ;;  %p1609_p9 = pnand %p1608_p6, %p1869_p8 }
 0x3dc   : > { %p1610_p12 = pneg %p1609_p9 }
 0x3dd   : > { %1443 = vmatpush3.bf16.msra.mxu0 %v1542_v52 }
 0x3de   : > { %1444 = vmatprep.subr.bf16.mxu0 %v1681_v0 }
 0x3e1   : > { %1445 = vmatpush3.bf16.msra.mxu0 %v1543_v62 }
 0x3e2   : > { %1446 = vmatprep.subr.bf16.mxu0 %v1681_v0 }
 0x3e5   : > { %1447 = vmatpush3.bf16.msra.mxu0 %v1544_v63 }
 0x448   : > { %v904_v53 = vpop.permute.xlu1 %903 }
 0x449   : > { %907 = vst.msk [vmem:[%s1987_s1 + $0x8] sm:$0xff] %vm906_vm7, %v904_v53 }
 0x4ab   : > { %v962_v55 = vpop.f32.mrb[8].mxu0 }
 0x4ac   : > { %v963_v56 = vadd.f32 %v1330_v54, %v962_v55  ;;  %v1430_v57 = vpop.f32.mrb[9].mxu0 }
 0x4ad   : > { %v965_v58 = vpop.f32.mrb[10].mxu0 }
 0x4ae   : > { %v968_v59 = vmax.f32 %v963_v56, 0.0  ;;  %v1431_v60 = vpop.f32.mrb[11].mxu0 }
 0x4b0   : > { %v974_v61 = vpack.c.bf16 %v968_v59, %v968_v59 }
 0x4b2   : > { %1437 = vmatmul.mubr.msk.bf16.vlgmr.msra.gmra.mrb[8].mxu1 %vm602_vm1, %v974_v61 }
 0x4b3   : > { %1460 = vmatprep.mubr.msk.bf16.mxu1 %vm1682_vm0, %v1681_v0  ;;  %1453 = vmatpush3.bf16.msra.mxu1 %v1545_v1 }
 0x4b4   : > { %1454 = vmatprep.subr.bf16.mxu1 %v1681_v0 }
 0x4b7   : > { %1455 = vmatpush3.bf16.msra.mxu1 %v1546_v2 }
 0x4b8   : > { %1456 = vmatprep.subr.bf16.mxu1 %v1681_v0 }
 0x4bb   : > { %1457 = vmatpush3.bf16.msra.mxu1 %v1547_v11 }
 0x4bc   : > { %1458 = vmatprep.subr.bf16.mxu1 %v1681_v0  ;;  %v1343_v0 = vld [vmem:[%s2185_s19] ss:$0 sm:$0xff]  ;;  %s1613_s19 = scalar_lea.vmem %s1612_s17, 512 }
 0x4bd   : > { %p1615_p0 = scmp.lt.s32.totalorder %s1613_s19, %s1607_s28 }
 0x4bf   : > { %1459 = vmatpush3.bf16.msra.mxu1 %v1548_v12  ;;  %p1616_p5 = por %p1615_p0, %p1614_p13 }
 0x4c1   : > { %p1617_p10 = pnand %p1616_p5, %p1610_p12 }
 0x585   : > { %v1030_v4 = vpop.f32.mrb[8].mxu1 }
 0x586   : > { %v1031_v5 = vadd.f32 %v1333_v3, %v1030_v4  ;;  %v1438_v6 = vpop.f32.mrb[9].mxu1 }
 0x587   : > { %v1033_v7 = vpop.f32.mrb[10].mxu1 }
 0x588   : > { %v1036_v8 = vmax.f32 %v1031_v5, 0.0  ;;  %v1439_v9 = vpop.f32.mrb[11].mxu1 }
 0x58a   : > { %v1046_v10 = vpack.c.bf16 %v1036_v8, %v1036_v8 }
 0x58c   : > { %1449 = vmatmul.mubr.msk.bf16.vlgmr.msra.gmra.mrb[12].mxu0 %vm693_vm2, %v1046_v10 }
 0x65f   : > { %v1114_v14 = vpop.f32.mrb[12].mxu0 }
 0x660   : > { %v1115_v15 = vadd.f32 %v1337_v13, %v1114_v14  ;;  %v1450_v16 = vpop.f32.mrb[13].mxu0 }
 0x661   : > { %v1117_v17 = vpop.f32.mrb[14].mxu0 }
 0x662   : > { %v1120_v18 = vmax.f32 %v1115_v15, 0.0  ;;  %v1451_v19 = vpop.f32.mrb[15].mxu0 }
 0x664   : > { %v1130_v20 = vpack.c.bf16 %v1120_v18, %v1120_v18 }
 0x666   : > { %1461 = vmatmul.mubr.msk.bf16.vlgmr.msra.gmra.mrb[12].mxu1 %vm693_vm2, %v1130_v20 }
 0x739   : > { %v1198_v21 = vpop.f32.mrb[12].mxu1 }
 0x73a   : > { %v1199_v22 = vadd.f32 %v1343_v0, %v1198_v21  ;;  %v1462_v23 = vpop.f32.mrb[13].mxu1 }
 0x73b   : > { %v1201_v24 = vpop.f32.mrb[14].mxu1 }
 0x73c   : > { %1204 = vst.msk [vmem:[%s1987_s1] sm:$0xff] %vm602_vm1, %v1199_v22  ;;  %v1463_v25 = vpop.f32.mrb[15].mxu1 }
 0x73d   : > { %1620 = shalt.err (!%p1617_p10)
}
 0x73e   : > { %s1621_s14 = scalar_lea.hbm %s2082_s6, 256  ;;  %s1625_s22 = scalar_lea.hbm %s2186_s20, 512 }
 0x73f   : > { %p1622_p1 = scmp.ne.s32.totalorder %s2082_s6, %s1621_s14  ;;  %p1626_p3 = scmp.lt.u32.totalorder %s2082_s6, %s2186_s20 }
 0x740   : > { %p1627_p4 = scmp.lt.u32.totalorder %s1625_s22, %s1621_s14  ;;  %p1629_p6 = scmp.lt.u32.totalorder %s1621_s14, %s2082_s6 }
 0x741   : > { %p1623_p2 = pnand %p1622_p1, %p1869_p8 }
 0x742   : > { %p1628_p11 = por %p1627_p4, %p1626_p3 }
 0x743   : > { %p1624_p7 = pneg %p1623_p2 }
 0x744   : > { %p1630_p9 = por %p1629_p6, %p1628_p11 }
 0x746   : > { %p1631_p12 = pnand %p1630_p9, %p1624_p7 }
 0x748   : > { %1634 = shalt.err (!%p1631_p12)
}
 0x749   : > { %1470 = dma.vmem_to_hbm [thread:$0]  (%p1869_p8), %s2084_s30, 256, %s2082_s6, %s1206_s0  }
 0x74a PF: > { %s2187_s28 = sld [smem:[#allocation11_spill]]  ;;  %s2188_s17 = sld [smem:[#allocation12_spill]] }
 0x74b   : > { %p2190_p0 = scmp.ge.s32.totalorder %s1677_s27, 2 }
 0x750   : > { %s1232_s19 = sand.u32 1, %s2187_s28   ;;  %p2189_p13 = scmp.ne.s32.totalorder %s2188_s17, 0 }
 0x751   : > { %s1233_s1 = scalar_lea.sflag [#allocation4], %s1232_s19 }
 0x752   : > { %p1481_p5 = pnand %p2190_p0, %p2189_p13 }
 0x754   : > { %1660 = dma.done.wait (!%p1481_p5), %s1233_s1, 256  }
 0x755   : > { %1662 = vsyncadd (!%p1481_p5), %s1233_s1, 4294967040  ;;  %s2191_s27 = sld [smem:[#allocation13_spill]]  ;;  %s2192_s14 = sld [smem:[#allocation14_spill]] }
 0x756   : > { %s2193_s24 = smov %s1669_s25  ;;  %s2194_s25 = smov %s1673_s26 }
 0x75b   : > { %p31_p10 = scmp.ge.s32.totalorder %s2191_s27, 4   ;;  %s2195_s26 = smov %s2192_s14 }
 0x75d   :  { %33 = sbr.rel (!%p31_p10) target bundleno = 13 (0xd), region = 137 }
 0x764   :  { %1238 = vsyncpa [#allocation3], 1 }
 0x765   :  { %1240 = vsyncpa [#allocation3 + $0x1], 1 }
 0x766   :  { %1241 = vsyncpa [#allocation6], 1 }
 0x767   :  { %1242 = vsyncpa [#allocation4], 1 }
 0x768   :  { %1244 = vsyncpa [#allocation4 + $0x1], 1 }

</bundles_post_ra>
